<compile_context>
chip_gen: v6e
topology: v6e:2x2x1
jax: 0.10.0
libtpu: 0.0.40
codegen_flags: <defaults>
</compile_context>

<pallas_src>
import functools

import jax
import jax.numpy as jnp
from jax.experimental import pallas as pl
from jax.experimental.pallas import tpu as pltpu

LANES = 128                # vreg lane width
MAX_TILE_ROWS = 4096       # (4096, 128) f32 = 2 MiB per block, 8 MiB double-buffered
SMALL_N_THRESHOLD = 16384  # below this, plain fused XLA already runs at roofline


def poly_kernel(w_ref, b_ref, x_ref, o_ref):
    # w_ref: (3,) f32 SMEM, b_ref: (1,) f32 SMEM, x_ref/o_ref: (tile_rows, 128) f32 VMEM.
    x = x_ref[...]
    w0 = w_ref[0]   # coefficient of x
    w1 = w_ref[1]   # coefficient of x^2
    w2 = w_ref[2]   # coefficient of x^3
    b = b_ref[0]
    # Horner form of  w0*x + w1*x^2 + w2*x^3 + b  (3 mul + 3 add per element).
    o_ref[...] = ((w2 * x + w1) * x + w0) * x + b


def _grid_semantics(grid_len):
    """CORE_PARALLEL on v7x (2 TCs/chip) when there are multiple tiles; else 'parallel'."""
    try:
        kind = jax.devices()[0].device_kind.lower()
    except Exception:
        kind = ""
    if "v7" in kind and grid_len > 1:
        return (pltpu.CORE_PARALLEL,)
    return ("parallel",)


@functools.partial(jax.jit, static_argnames=("n", "rows", "tile_rows"))
def _poly_padded(x, w, b, *, n, rows, tile_rows):
    # Pad only to a multiple of 8x128 elements; partial last tile is handled by Pallas.
    padded = rows * LANES
    x_slab = jnp.pad(x, (0, padded - n)).reshape(rows, LANES)
    grid_len = pl.cdiv(rows, tile_rows)

    out_slab = pl.pallas_call(
        poly_kernel,
        out_shape=jax.ShapeDtypeStruct((rows, LANES), jnp.float32),
        grid=(grid_len,),
        in_specs=[
            pl.BlockSpec(memory_space=pltpu.MemorySpace.SMEM),    # weight (3,) scalars
            pl.BlockSpec(memory_space=pltpu.MemorySpace.SMEM),    # bias (1,) scalar
            pl.BlockSpec((tile_rows, LANES), lambda i: (i, 0)),   # lane-dense input tile
        ],
        out_specs=pl.BlockSpec((tile_rows, LANES), lambda i: (i, 0)),
        compiler_params=pltpu.CompilerParams(
            dimension_semantics=_grid_semantics(grid_len),
            vmem_limit_bytes=32 * 1024 * 1024,       # 8 MiB of buffers; ample headroom
            allow_input_fusion=[False, False, True],  # fuse pad/reshape into input DMA
        ),
    )(w, b, x_slab)

    # TODO(synk): if the consumer can take the padded (rows, 128) slab, skip this slice copy.
    return out_slab.reshape(-1)[:n].reshape(n, 1)


def poly_forward(x, weight, bias):
    """x: (N,) or (N,1) raw inputs; weight: (1,3) torch Linear layout; bias: (1,)."""
    x = jnp.asarray(x, jnp.float32).reshape(-1)
    n = x.shape[0]
    w = jnp.asarray(weight, jnp.float32).reshape(3)   # [w_x, w_x2, w_x3]
    b = jnp.asarray(bias, jnp.float32).reshape(1)

    if n < SMALL_N_THRESHOLD:
        # Small/medium batch: fused XLA elementwise is already at HBM roofline
        # with zero pad/slice copies; a Pallas launch would only add overhead.
        out = ((w[2] * x + w[1]) * x + w[0]) * x + b[0]
        return out.reshape(n, 1)

    # Lane-dense slab: rows = ceil(N/128), rounded up to a multiple of 8 sublanes only.
    rows = -(-n // LANES)
    rows = ((rows + 7) // 8) * 8
    tile_rows = rows if rows <= MAX_TILE_ROWS else MAX_TILE_ROWS
    return _poly_padded(x, w, b, n=n, rows=rows, tile_rows=tile_rows)


def _reference(x, weight, bias):
    # Pure-JAX reference of the exact PyTorch semantics:
    #   make_features -> (N, 3); nn.Linear(3, 1) -> (N, 1).
    x = jnp.asarray(x, jnp.float32).reshape(-1)
    feats = jnp.stack([x, x**2, x**3], axis=1)
    w = jnp.asarray(weight, jnp.float32).reshape(1, 3)
    b = jnp.asarray(bias, jnp.float32).reshape(1)
    return jnp.matmul(feats, w.T, precision=jax.lax.Precision.HIGHEST) + b


if __name__ == "__main__":
    key = jax.random.PRNGKey(0)
    kx, kw, kb, kt = jax.random.split(key, 4)

    # Deterministic synthetic "Linear(3, 1)" parameters (not a checkpoint).
    weight = jax.random.normal(kw, (1, 3), dtype=jnp.float32) * 0.5
    bias = jax.random.normal(kb, (1,), dtype=jnp.float32) * 0.1

    # 1) Single full-array block path (rows <= MAX_TILE_ROWS).
    N_big = 100_000
    x_big = jax.random.normal(kx, (N_big,), dtype=jnp.float32)
    out_big = jax.block_until_ready(poly_forward(x_big, weight, bias))
    ref_big = _reference(x_big, weight, bias)
    assert out_big.shape == (N_big, 1), out_big.shape
    assert jnp.allclose(out_big, ref_big, atol=1e-4, rtol=1e-5), float(
        jnp.max(jnp.abs(out_big - ref_big)))

    # 2) Multi-step grid with a partial last block (rows > MAX_TILE_ROWS).
    N_tiled = 600_000
    x_tiled = jax.random.normal(kt, (N_tiled,), dtype=jnp.float32)
    out_tiled = jax.block_until_ready(poly_forward(x_tiled, weight, bias))
    ref_tiled = _reference(x_tiled, weight, bias)
    assert out_tiled.shape == (N_tiled, 1), out_tiled.shape
    assert jnp.allclose(out_tiled, ref_tiled, atol=1e-4, rtol=1e-5), float(
        jnp.max(jnp.abs(out_tiled - ref_tiled)))

    # 3) Tiny batch: small-N fallback (no Pallas launch).
    N_small = 8
    x_small = jax.random.normal(kx, (N_small,), dtype=jnp.float32)
    out_small = jax.block_until_ready(poly_forward(x_small, weight, bias))
    ref_small = _reference(x_small, weight, bias)
    assert out_small.shape == (N_small, 1), out_small.shape
    assert jnp.allclose(out_small, ref_small, atol=1e-4, rtol=1e-5)

    print("KERNEL_OK")
</pallas_src>

<mosaic_0001>
module attributes {stable_mosaic.version = 11 : i64} {
  func.func @poly_kernel(%arg0: i32, %arg1: memref<3xf32, #tpu.memory_space<smem>>, %arg2: memref<1xf32, #tpu.memory_space<smem>>, %arg3: memref<784x128xf32, #tpu.memory_space<vmem>>, %arg4: memref<784x128xf32, #tpu.memory_space<vmem>>) attributes {dimension_semantics = [#tpu.dimension_semantics<parallel>], iteration_bounds = array<i64: 1>, scalar_prefetch = 0 : i64, scratch_operands = 0 : i64, tpu.core_type = #tpu.core_type<tc>, window_params = [{transform_indices = @transform_0, window_bounds = array<i64: 3>}, {transform_indices = @transform_1, window_bounds = array<i64: 1>}, {transform_indices = @transform_2, window_bounds = array<i64: 784, 128>}, {transform_indices = @transform_3, window_bounds = array<i64: 784, 128>}]} {
    %c0 = arith.constant 0 : index
    %c0_0 = arith.constant 0 : index
    %0 = vector.load %arg3[%c0, %c0_0] : memref<784x128xf32, #tpu.memory_space<vmem>>, vector<784x128xf32>
    %c0_1 = arith.constant 0 : index
    %1 = memref.load %arg1[%c0_1] : memref<3xf32, #tpu.memory_space<smem>>
    %c1 = arith.constant 1 : index
    %2 = memref.load %arg1[%c1] : memref<3xf32, #tpu.memory_space<smem>>
    %c2 = arith.constant 2 : index
    %3 = memref.load %arg1[%c2] : memref<3xf32, #tpu.memory_space<smem>>
    %c0_2 = arith.constant 0 : index
    %4 = memref.load %arg2[%c0_2] : memref<1xf32, #tpu.memory_space<smem>>
    %5 = vector.broadcast %3 : f32 to vector<784x128xf32>
    %6 = arith.mulf %5, %0 : vector<784x128xf32>
    %7 = vector.broadcast %2 : f32 to vector<784x128xf32>
    %8 = arith.addf %6, %7 : vector<784x128xf32>
    %9 = arith.mulf %8, %0 : vector<784x128xf32>
    %10 = vector.broadcast %1 : f32 to vector<784x128xf32>
    %11 = arith.addf %9, %10 : vector<784x128xf32>
    %12 = arith.mulf %11, %0 : vector<784x128xf32>
    %13 = vector.broadcast %4 : f32 to vector<784x128xf32>
    %14 = arith.addf %12, %13 : vector<784x128xf32>
    %c0_3 = arith.constant 0 : index
    %c0_4 = arith.constant 0 : index
    %15 = vector.load %arg4[%c0_3, %c0_4] : memref<784x128xf32, #tpu.memory_space<vmem>>, vector<784x128xf32>
    tpu.vector_store %arg4[%c0_3, %c0_4], %14 {strides = array<i32>} : memref<784x128xf32, #tpu.memory_space<vmem>>, vector<784x128xf32>,
    return
  }
  func.func @transform_0(%arg0: i32) -> i32 {
    %c0_i32 = arith.constant 0 : i32
    %c0_i32_0 = arith.constant 0 : i32
    return %c0_i32 : i32
  }
  func.func @transform_1(%arg0: i32) -> i32 {
    %c0_i32 = arith.constant 0 : i32
    %c0_i32_0 = arith.constant 0 : i32
    return %c0_i32 : i32
  }
  func.func @transform_2(%arg0: i32) -> (i32, i32) {
    %c0_i32 = arith.constant 0 : i32
    %c0_i32_0 = arith.constant 0 : i32
    return %arg0, %c0_i32 : i32, i32
  }
  func.func @transform_3(%arg0: i32) -> (i32, i32) {
    %c0_i32 = arith.constant 0 : i32
    %c0_i32_0 = arith.constant 0 : i32
    return %arg0, %c0_i32 : i32, i32
  }
}

</mosaic_0001>

<bundles_post_ra>
// kernel: _poly_padded.2
= control target key start
LH: loop header
LB: loop body
LE: loop exit
PB: predicated region body
PF: predicated region fallthrough
CT: control target
= control target key end

     0   :  { %11 = vsyncpa [#allocation10], 0  ;;  %s4560_s0 = inlined_call_operand.vmem [shape: f32[3], index: 0, kind: input, shape index: {}]   ;;  %s4561_s1 = inlined_call_operand.<no memory space> [shape: f32[1], index: 1, kind: input, shape index: {}]   ;;  %s4562_s2 = inlined_call_operand.hbm [shape: f32[100000], index: 2, kind: input, shape index: {}]   ;;  %s4563_s3 = inlined_call_operand.<no memory space> [shape: f32[], index: 3, kind: input, shape index: {}]   ;;  %s4564_s4 = inlined_call_operand.vmem [shape: f32[784,128], index: 4, kind: output, shape index: {}]  }
   0x1   :  { %s19_s19 = sshll.u32 %s4560_s0, 4  ;;  %s20_s19 = int_to_ptr.vmem [resolvable:$true] %s19_s19 }
   0x2   :  { %12 = vsyncpa [#allocation9], 0  ;;  %s1822_s20 = scalar_lea.vmem %s20_s19, 16  ;;  %p1827_p1 = scmp.lt.s32.totalorder %s20_s19, %s20_s19 }
   0x3   :  { %p1823_p0 = scmp.ne.s32.totalorder %s20_s19, %s1822_s20  ;;  %p1828_p2 = scmp.lt.s32.totalorder %s1822_s20, %s1822_s20 }
   0x5   :  { %p1829_p3 = por %p1828_p2, %p1827_p1 }
   0x7   :  { %p1830_p4 = pnand %p1829_p3, %p1823_p0 }
   0x9   :  { %1833 = shalt.err (!%p1830_p4)
}
   0xa   :  { %s1858_s21 = smov [#allocation8]   ;;  %s1859_s22 = smov [#allocation11]  }
   0xb   :  { %22 = dma.vmem_to_smem %s20_s19, 16, %s1858_s21, [#allocation10]  }
   0xc   :  { %s31_s23 = sshll.u32 %s1859_s22, 4  ;;  %s32_s23 = int_to_ptr.vmem [resolvable:$true] %s31_s23 }
   0xd   :  { %s1842_s24 = scalar_lea.vmem %s32_s23, 12544  ;;  %p1847_p6 = scmp.lt.s32.totalorder %s32_s23, %s32_s23 }
   0xe   :  { %p1843_p5 = scmp.ne.s32.totalorder %s32_s23, %s1842_s24  ;;  %p1848_p7 = scmp.lt.s32.totalorder %s1842_s24, %s1842_s24 }
  0x10   :  { %p1849_p8 = por %p1848_p7, %p1847_p6 }
  0x12   :  { %p1850_p9 = pnand %p1849_p8, %p1843_p5 }
  0x14   :  { %1853 = shalt.err (!%p1850_p9)
}
  0x15   :  { %34 = dma.hbm_to_vmem [thread:$0]  %s4562_s2, 12544, %s32_s23, [#allocation9]  }
  0x16   :  { %1854 = dma.done.wait [#allocation10], 16  }
  0x17   :  { %1855 = vsyncadd [#allocation10], 4294967280 }
  0x18   :  { %1856 = dma.done.wait [#allocation9], 12544  }
  0x19   :  { %1857 = vsyncadd [#allocation9], 4294954752 }
  0x1a   :  { %41 = sfence }
  0x1b   :  { %s1118_s26 = sld [smem:[#allocation8]]  ;;  %v1012_v1 = vlaneseq  ;;  %v1894_v2 = vld [vmem:[#allocation11] sm:$0xff]  ;;  %v1896_v3 = vld [vmem:[#allocation11 + $0x8] sm:$0xff]  ;;  %v1898_v4 = vld [vmem:[#allocation11 + $0x10] sm:$0xff]  ;;  %v1945_v26 = vstv %s4561_s1 }
  0x1c   :  { %s1818_s27 = sld [smem:[#allocation8 + $0x1]]  ;;  %4763 = vst [vmem:[#allocation15_spill] sm:$0xff] %v1894_v2  ;;  %4764 = vst [vmem:[#allocation16_spill] sm:$0xff] %v1896_v3  ;;  %v1900_v5 = vld [vmem:[#allocation11 + $0x18] sm:$0xff]  ;;  %v1902_v6 = vld [vmem:[#allocation11 + $0x20] sm:$0xff] }
  0x1d   :  { %s1819_s28 = sld [smem:[#allocation8 + $0x2]]  ;;  %4765 = vst [vmem:[#allocation17_spill] sm:$0xff] %v1898_v4  ;;  %4766 = vst [vmem:[#allocation18_spill] sm:$0xff] %v1900_v5  ;;  %v1904_v7 = vld [vmem:[#allocation11 + $0x28] sm:$0xff]  ;;  %v1906_v8 = vld [vmem:[#allocation11 + $0x30] sm:$0xff]  ;;  %v1926_v18 = vadd.s32 99328, %v1012_v1 }
  0x1e   :  { %4767 = vst [vmem:[#allocation19_spill] sm:$0xff] %v1902_v6  ;;  %4768 = vst [vmem:[#allocation20_spill] sm:$0xff] %v1904_v7  ;;  %v1908_v9 = vld [vmem:[#allocation11 + $0x38] sm:$0xff]  ;;  %v1910_v10 = vld [vmem:[#allocation11 + $0x40] sm:$0xff] }
  0x1f   :  { %4769 = vst [vmem:[#allocation21_spill] sm:$0xff] %v1906_v8  ;;  %4770 = vst [vmem:[#allocation22_spill] sm:$0xff] %v1908_v9  ;;  %v1912_v11 = vld [vmem:[#allocation11 + $0x48] sm:$0xff]  ;;  %v1914_v12 = vld [vmem:[#allocation11 + $0x50] sm:$0xff]  ;;  %vm1014_vm0 = vcmp.lt.s32.totalorder %v1926_v18, 100000 }
  0x20   :  { %4771 = vst [vmem:[#allocation23_spill] sm:$0xff] %v1910_v10  ;;  %4772 = vst [vmem:[#allocation24_spill] sm:$0xff] %v1912_v11  ;;  %v1916_v13 = vld [vmem:[#allocation11 + $0x58] sm:$0xff]  ;;  %v1918_v14 = vld [vmem:[#allocation11 + $0x60] sm:$0xff] }
  0x21   :  { %4773 = vst [vmem:[#allocation25_spill] sm:$0xff] %v1914_v12  ;;  %4774 = vst [vmem:[#allocation26_spill] sm:$0xff] %v1916_v13  ;;  %v1920_v15 = vld [vmem:[#allocation11 + $0x68] sm:$0xff]  ;;  %v1922_v16 = vld [vmem:[#allocation11 + $0x70] sm:$0xff]  ;;  %v1940_v25 = vstv %s1118_s26 }
  0x22   :  { %4775 = vst [vmem:[#allocation27_spill] sm:$0xff] %v1918_v14  ;;  %4776 = vst [vmem:[#allocation28_spill] sm:$0xff] %v1920_v15  ;;  %v1924_v17 = vld [vmem:[#allocation11 + $0x78] sm:$0xff]  ;;  %v1928_v19 = vld [vmem:[#allocation11 + $0x80] sm:$0xff]  ;;  %v1938_v24 = vstv %s1818_s27 }
  0x23   :  { %4777 = vst [vmem:[#allocation29_spill] sm:$0xff] %v1922_v16  ;;  %4778 = vst [vmem:[#allocation30_spill] sm:$0xff] %v1924_v17  ;;  %v1930_v20 = vld [vmem:[#allocation11 + $0x88] sm:$0xff]  ;;  %v1932_v21 = vld [vmem:[#allocation11 + $0x90] sm:$0xff]  ;;  %v1936_v23 = vstv %s1819_s28 }
  0x24   :  { %4779 = vst [vmem:[#allocation31_spill] sm:$0xff] %v1928_v19  ;;  %4780 = vst [vmem:[#allocation32_spill] sm:$0xff] %v1930_v20  ;;  %v1934_v22 = vld [vmem:[#allocation11 + $0x98] sm:$0xff]  ;;  %v1947_v27 = vld [vmem:[#allocation11 + $0xa0] sm:$0xff]  ;;  %v1957_v31 = vmul.f32 %v1936_v23, %v1894_v2  ;;  %v1961_v32 = vmul.f32 %v1936_v23, %v1896_v3  ;;  %v1965_v33 = vmul.f32 %v1936_v23, %v1898_v4 }
  0x25   :  { %4781 = vst [vmem:[#allocation33_spill] sm:$0xff] %v1932_v21  ;;  %4782 = vst [vmem:[#allocation34_spill] sm:$0xff] %v1934_v22  ;;  %v1949_v28 = vld [vmem:[#allocation11 + $0xa8] sm:$0xff]  ;;  %v1951_v29 = vld [vmem:[#allocation11 + $0xb0] sm:$0xff]  ;;  %v1969_v34 = vmul.f32 %v1936_v23, %v1900_v5  ;;  %v1981_v39 = vmul.f32 %v1936_v23, %v1902_v6  ;;  %v1985_v40 = vmul.f32 %v1936_v23, %v1904_v7 }
  0x26   :  { %4783 = vst [vmem:[#allocation35_spill] sm:$0xff] %v1940_v25  ;;  %4784 = vst [vmem:[#allocation36_spill] sm:$0xff] %v1945_v26  ;;  %v1953_v30 = vld [vmem:[#allocation11 + $0xb8] sm:$0xff]  ;;  %v1971_v35 = vld [vmem:[#allocation11 + $0xc0] sm:$0xff]  ;;  %v1989_v41 = vmul.f32 %v1936_v23, %v1906_v8  ;;  %v1993_v42 = vmul.f32 %v1936_v23, %v1908_v9  ;;  %v2005_v47 = vmul.f32 %v1936_v23, %v1910_v10 }
  0x27   :  { %4785 = vst [vmem:[#allocation37_spill] sm:$0xff] %v1947_v27  ;;  %4786 = vst [vmem:[#allocation38_spill] sm:$0xff] %v1949_v28  ;;  %v1973_v36 = vld [vmem:[#allocation11 + $0xc8] sm:$0xff]  ;;  %v1975_v37 = vld [vmem:[#allocation11 + $0xd0] sm:$0xff]  ;;  %v2009_v48 = vmul.f32 %v1936_v23, %v1912_v11  ;;  %v2013_v49 = vmul.f32 %v1936_v23, %v1914_v12  ;;  %v2017_v50 = vmul.f32 %v1936_v23, %v1916_v13 }
  0x28   :  { %4787 = vst [vmem:[#allocation39_spill] sm:$0xff] %v1951_v29  ;;  %4788 = vst [vmem:[#allocation40_spill] sm:$0xff] %v1953_v30  ;;  %v1977_v38 = vld [vmem:[#allocation11 + $0xd8] sm:$0xff]  ;;  %v1995_v43 = vld [vmem:[#allocation11 + $0xe0] sm:$0xff]  ;;  %v2029_v55 = vmul.f32 %v1936_v23, %v1918_v14  ;;  %v2033_v56 = vmul.f32 %v1936_v23, %v1920_v15  ;;  %v2037_v57 = vmul.f32 %v1936_v23, %v1922_v16 }
  0x29   :  { %4789 = vst [vmem:[#allocation41_spill] sm:$0xff] %v1971_v35  ;;  %4790 = vst [vmem:[#allocation42_spill] sm:$0xff] %v1973_v36  ;;  %v1997_v44 = vld [vmem:[#allocation11 + $0xe8] sm:$0xff]  ;;  %v1999_v45 = vld [vmem:[#allocation11 + $0xf0] sm:$0xff]  ;;  %v2041_v58 = vmul.f32 %v1936_v23, %v1924_v17  ;;  %v2053_v63 = vmul.f32 %v1936_v23, %v1928_v19  ;;  %v2057_v1 = vmul.f32 %v1936_v23, %v1930_v20 }
  0x2a   :  { %4791 = vst [vmem:[#allocation43_spill] sm:$0xff] %v1975_v37  ;;  %4792 = vst [vmem:[#allocation44_spill] sm:$0xff] %v1977_v38  ;;  %v2001_v46 = vld [vmem:[#allocation11 + $0xf8] sm:$0xff]  ;;  %v2019_v51 = vld [vmem:[#allocation11 + $0x100] sm:$0xff]  ;;  %v2061_v0 = vmul.f32 %v1936_v23, %v1932_v21  ;;  %v2065_v26 = vmul.f32 %v1936_v23, %v1934_v22  ;;  %v2077_v20 = vmul.f32 %v1936_v23, %v1947_v27 }
  0x2b   :  { %4793 = vst [vmem:[#allocation45_spill] sm:$0xff] %v1995_v43  ;;  %4794 = vst [vmem:[#allocation46_spill] sm:$0xff] %v1997_v44  ;;  %v2021_v52 = vld [vmem:[#allocation11 + $0x108] sm:$0xff]  ;;  %v2023_v53 = vld [vmem:[#allocation11 + $0x110] sm:$0xff]  ;;  %v2081_v21 = vmul.f32 %v1936_v23, %v1949_v28  ;;  %v2085_v22 = vmul.f32 %v1936_v23, %v1951_v29  ;;  %v2089_v15 = vmul.f32 %v1936_v23, %v1953_v30 }
  0x2c   :  { %4795 = vst [vmem:[#allocation47_spill] sm:$0xff] %v1999_v45  ;;  %4796 = vst [vmem:[#allocation48_spill] sm:$0xff] %v2001_v46  ;;  %v2025_v54 = vld [vmem:[#allocation11 + $0x118] sm:$0xff]  ;;  %v2043_v59 = vld [vmem:[#allocation11 + $0x120] sm:$0xff]  ;;  %v2101_v28 = vmul.f32 %v1936_v23, %v1971_v35  ;;  %v2105_v29 = vmul.f32 %v1936_v23, %v1973_v36  ;;  %v2109_v30 = vmul.f32 %v1936_v23, %v1975_v37 }
  0x2d   :  { %4797 = vst [vmem:[#allocation49_spill] sm:$0xff] %v2019_v51  ;;  %4798 = vst [vmem:[#allocation50_spill] sm:$0xff] %v2021_v52  ;;  %v2045_v60 = vld [vmem:[#allocation11 + $0x128] sm:$0xff]  ;;  %v2047_v61 = vld [vmem:[#allocation11 + $0x130] sm:$0xff]  ;;  %v2113_v11 = vmul.f32 %v1936_v23, %v1977_v38  ;;  %v2123_v35 = vmul.f32 %v1936_v23, %v1995_v43  ;;  %v2127_v36 = vmul.f32 %v1936_v23, %v1997_v44 }
  0x2e   :  { %4799 = vst [vmem:[#allocation51_spill] sm:$0xff] %v2023_v53  ;;  %4800 = vst [vmem:[#allocation52_spill] sm:$0xff] %v2025_v54  ;;  %v2049_v62 = vld [vmem:[#allocation11 + $0x138] sm:$0xff]  ;;  %v2067_v25 = vld [vmem:[#allocation11 + $0x140] sm:$0xff]  ;;  %v2131_v37 = vmul.f32 %v1936_v23, %v1999_v45  ;;  %v2135_v38 = vmul.f32 %v1936_v23, %v2001_v46  ;;  %v2145_v43 = vmul.f32 %v1936_v23, %v2019_v51 }
  0x2f   :  { %4801 = vst [vmem:[#allocation53_spill] sm:$0xff] %v2043_v59  ;;  %4802 = vst [vmem:[#allocation54_spill] sm:$0xff] %v2045_v60  ;;  %v2069_v17 = vld [vmem:[#allocation11 + $0x148] sm:$0xff]  ;;  %v2071_v16 = vld [vmem:[#allocation11 + $0x150] sm:$0xff]  ;;  %v2149_v44 = vmul.f32 %v1936_v23, %v2021_v52  ;;  %v2153_v45 = vmul.f32 %v1936_v23, %v2023_v53  ;;  %v2157_v46 = vmul.f32 %v1936_v23, %v2025_v54 }
  0x30   :  { %4803 = vst [vmem:[#allocation55_spill] sm:$0xff] %v2047_v61  ;;  %4804 = vst [vmem:[#allocation56_spill] sm:$0xff] %v2049_v62  ;;  %v2073_v19 = vld [vmem:[#allocation11 + $0x158] sm:$0xff]  ;;  %v2091_v14 = vld [vmem:[#allocation11 + $0x160] sm:$0xff]  ;;  %v2167_v51 = vmul.f32 %v1936_v23, %v2043_v59  ;;  %v2171_v52 = vmul.f32 %v1936_v23, %v2045_v60  ;;  %v2175_v53 = vmul.f32 %v1936_v23, %v2047_v61 }
  0x31   :  { %4805 = vst [vmem:[#allocation57_spill] sm:$0xff] %v2067_v25  ;;  %4806 = vst [vmem:[#allocation58_spill] sm:$0xff] %v2069_v17  ;;  %v2093_v13 = vld [vmem:[#allocation11 + $0x168] sm:$0xff]  ;;  %v2095_v12 = vld [vmem:[#allocation11 + $0x170] sm:$0xff]  ;;  %v2179_v54 = vmul.f32 %v1936_v23, %v2049_v62  ;;  %v2189_v59 = vmul.f32 %v1936_v23, %v2067_v25  ;;  %v2193_v60 = vmul.f32 %v1936_v23, %v2069_v17 }
  0x32   :  { %4807 = vst [vmem:[#allocation59_spill] sm:$0xff] %v2071_v16  ;;  %4808 = vst [vmem:[#allocation60_spill] sm:$0xff] %v2073_v19  ;;  %v2097_v27 = vld [vmem:[#allocation11 + $0x178] sm:$0xff]  ;;  %v2115_v10 = vld [vmem:[#allocation11 + $0x180] sm:$0xff]  ;;  %v2197_v61 = vmul.f32 %v1936_v23, %v2071_v16  ;;  %v2201_v62 = vmul.f32 %v1936_v23, %v2073_v19  ;;  %v2211_v25 = vmul.f32 %v1936_v23, %v2091_v14 }
  0x33   :  { %4809 = vst [vmem:[#allocation61_spill] sm:$0xff] %v2091_v14  ;;  %4810 = vst [vmem:[#allocation62_spill] sm:$0xff] %v2093_v13  ;;  %v2117_v9 = vld [vmem:[#allocation11 + $0x188] sm:$0xff]  ;;  %v2119_v8 = vld [vmem:[#allocation11 + $0x190] sm:$0xff]  ;;  %v2215_v17 = vmul.f32 %v1936_v23, %v2093_v13  ;;  %v2219_v16 = vmul.f32 %v1936_v23, %v2095_v12  ;;  %v2223_v19 = vmul.f32 %v1936_v23, %v2097_v27 }
  0x34   :  { %4811 = vst [vmem:[#allocation63_spill] sm:$0xff] %v2095_v12  ;;  %4812 = vst [vmem:[#allocation64_spill] sm:$0xff] %v2097_v27  ;;  %v2137_v7 = vld [vmem:[#allocation11 + $0x198] sm:$0xff]  ;;  %v2139_v6 = vld [vmem:[#allocation11 + $0x1a0] sm:$0xff]  ;;  %v2233_v14 = vmul.f32 %v1936_v23, %v2115_v10  ;;  %v2237_v13 = vmul.f32 %v1936_v23, %v2117_v9  ;;  %v2241_v12 = vmul.f32 %v1936_v23, %v2119_v8 }
  0x35   :  { %4813 = vst [vmem:[#allocation65_spill] sm:$0xff] %v2115_v10  ;;  %4814 = vst [vmem:[#allocation66_spill] sm:$0xff] %v2117_v9  ;;  %v2141_v5 = vld [vmem:[#allocation11 + $0x1a8] sm:$0xff]  ;;  %v2159_v4 = vld [vmem:[#allocation11 + $0x1b0] sm:$0xff]  ;;  %v2245_v27 = vmul.f32 %v1936_v23, %v2137_v7  ;;  %v2256_v9 = vmul.f32 %v1936_v23, %v2139_v6  ;;  %v2516_v18 = vadd.f32 %v1938_v24, %v1969_v34 }
  0x36   :  { %4815 = vst [vmem:[#allocation67_spill] sm:$0xff] %v2119_v8  ;;  %4816 = vst [vmem:[#allocation68_spill] sm:$0xff] %v2137_v7  ;;  %v2161_v3 = vld [vmem:[#allocation11 + $0x1b8] sm:$0xff]  ;;  %v2163_v2 = vld [vmem:[#allocation11 + $0x1c0] sm:$0xff]  ;;  %v2260_v8 = vmul.f32 %v1936_v23, %v2141_v5  ;;  %v2264_v7 = vmul.f32 %v1936_v23, %v2159_v4  ;;  %v2536_v34 = vadd.f32 %v1938_v24, %v2005_v47 }
  0x37   :  { %4817 = vst [vmem:[#allocation69_spill] sm:$0xff] %v2139_v6  ;;  %4818 = vst [vmem:[#allocation70_spill] sm:$0xff] %v2141_v5  ;;  %v2268_v10 = vmul.f32 %v1936_v23, %v2161_v3  ;;  %v2278_v6 = vmul.f32 %v1936_v23, %v2163_v2  ;;  %v2556_v47 = vadd.f32 %v1938_v24, %v2033_v56 }
  0x38   :  { %4819 = vst [vmem:[#allocation71_spill] sm:$0xff] %v2149_v44  ;;  %4820 = vst [vmem:[#allocation72_spill] sm:$0xff] %v2153_v45  ;;  %v2183_v45 = vld [vmem:[#allocation11 + $0x1d0] sm:$0xff]  ;;  %v2185_v44 = vld [vmem:[#allocation11 + $0x1d8] sm:$0xff]  ;;  %v2580_v56 = vadd.f32 %v1938_v24, %v2065_v26  ;;  %v2600_v26 = vadd.f32 %v1938_v24, %v2101_v28  ;;  %v2620_v28 = vadd.f32 %v1938_v24, %v2127_v36 }
  0x39   :  { %4821 = vst [vmem:[#allocation73_spill] sm:$0xff] %v2157_v46  ;;  %4822 = vst [vmem:[#allocation74_spill] sm:$0xff] %v2159_v4  ;;  %v2181_v46 = vld [vmem:[#allocation11 + $0x1c8] sm:$0xff]  ;;  %v2286_v4 = vmul.f32 %v1936_v23, %v2183_v45 }
  0x3a   :  { %4823 = vst [vmem:[#allocation75_spill] sm:$0xff] %v2161_v3  ;;  %4824 = vst [vmem:[#allocation76_spill] sm:$0xff] %v2163_v2  ;;  %v2282_v5 = vmul.f32 %v1936_v23, %v2181_v46  ;;  %v2290_v3 = vmul.f32 %v1936_v23, %v2185_v44 }
  0x3b   :  { %4825 = vst [vmem:[#allocation77_spill] sm:$0xff] %v2171_v52  ;;  %4826 = vst [vmem:[#allocation78_spill] sm:$0xff] %v2175_v53  ;;  %v2205_v53 = vld [vmem:[#allocation11 + $0x1e8] sm:$0xff]  ;;  %v2207_v52 = vld [vmem:[#allocation11 + $0x1f0] sm:$0xff] }
  0x3c   :  { %4827 = vst [vmem:[#allocation79_spill] sm:$0xff] %v2179_v54  ;;  %4828 = vst [vmem:[#allocation80_spill] sm:$0xff] %v2181_v46  ;;  %v2203_v54 = vld [vmem:[#allocation11 + $0x1e0] sm:$0xff]  ;;  %v2304_v46 = vmul.f32 %v1936_v23, %v2205_v53 }
  0x3d   :  { %4829 = vst [vmem:[#allocation81_spill] sm:$0xff] %v2183_v45  ;;  %4830 = vst [vmem:[#allocation82_spill] sm:$0xff] %v2185_v44  ;;  %v2300_v2 = vmul.f32 %v1936_v23, %v2203_v54  ;;  %v2308_v45 = vmul.f32 %v1936_v23, %v2207_v52 }
  0x3e   :  { %4831 = vst [vmem:[#allocation83_spill] sm:$0xff] %v2193_v60  ;;  %4832 = vst [vmem:[#allocation84_spill] sm:$0xff] %v2197_v61  ;;  %v2227_v61 = vld [vmem:[#allocation11 + $0x200] sm:$0xff]  ;;  %v2229_v60 = vld [vmem:[#allocation11 + $0x208] sm:$0xff] }
  0x3f   :  { %4833 = vst [vmem:[#allocation85_spill] sm:$0xff] %v2201_v62  ;;  %4834 = vst [vmem:[#allocation86_spill] sm:$0xff] %v2203_v54  ;;  %v2225_v62 = vld [vmem:[#allocation11 + $0x1f8] sm:$0xff]  ;;  %v2322_v54 = vmul.f32 %v1936_v23, %v2227_v61 }
  0x40   :  { %4835 = vst [vmem:[#allocation87_spill] sm:$0xff] %v2205_v53  ;;  %4836 = vst [vmem:[#allocation88_spill] sm:$0xff] %v2207_v52  ;;  %v2312_v44 = vmul.f32 %v1936_v23, %v2225_v62  ;;  %v2326_v53 = vmul.f32 %v1936_v23, %v2229_v60 }
  0x41   :  { %4837 = vst [vmem:[#allocation89_spill] sm:$0xff] %v2215_v17  ;;  %4838 = vst [vmem:[#allocation90_spill] sm:$0xff] %v2219_v16  ;;  %v2249_v16 = vld [vmem:[#allocation11 + $0x218] sm:$0xff]  ;;  %v2251_v17 = vld [vmem:[#allocation11 + $0x220] sm:$0xff] }
  0x42   :  { %4839 = vst [vmem:[#allocation91_spill] sm:$0xff] %v2223_v19  ;;  %4840 = vst [vmem:[#allocation92_spill] sm:$0xff] %v2225_v62  ;;  %v2247_v19 = vld [vmem:[#allocation11 + $0x210] sm:$0xff]  ;;  %v2334_v62 = vmul.f32 %v1936_v23, %v2249_v16 }
  0x43   :  { %4841 = vst [vmem:[#allocation93_spill] sm:$0xff] %v2227_v61  ;;  %4842 = vst [vmem:[#allocation94_spill] sm:$0xff] %v2229_v60  ;;  %v2330_v52 = vmul.f32 %v1936_v23, %v2247_v19  ;;  %v2344_v61 = vmul.f32 %v1936_v23, %v2251_v17 }
  0x44   :  { %4843 = vst [vmem:[#allocation95_spill] sm:$0xff] %v2237_v13  ;;  %4844 = vst [vmem:[#allocation96_spill] sm:$0xff] %v2241_v12  ;;  %v2272_v12 = vld [vmem:[#allocation11 + $0x230] sm:$0xff]  ;;  %v2274_v13 = vld [vmem:[#allocation11 + $0x238] sm:$0xff] }
  0x45   :  { %4845 = vst [vmem:[#allocation97_spill] sm:$0xff] %v2245_v27  ;;  %4846 = vst [vmem:[#allocation98_spill] sm:$0xff] %v2247_v19  ;;  %v2270_v27 = vld [vmem:[#allocation11 + $0x228] sm:$0xff]  ;;  %v2352_v19 = vmul.f32 %v1936_v23, %v2272_v12 }
  0x46   :  { %4847 = vst [vmem:[#allocation99_spill] sm:$0xff] %v2249_v16  ;;  %4848 = vst [vmem:[#allocation100_spill] sm:$0xff] %v2251_v17  ;;  %v2348_v60 = vmul.f32 %v1936_v23, %v2270_v27  ;;  %v2356_v16 = vmul.f32 %v1936_v23, %v2274_v13 }
  0x47   :  { %4849 = vst [vmem:[#allocation101_spill] sm:$0xff] %v2260_v8  ;;  %4850 = vst [vmem:[#allocation102_spill] sm:$0xff] %v2264_v7  ;;  %v2294_v7 = vld [vmem:[#allocation11 + $0x248] sm:$0xff]  ;;  %v2296_v8 = vld [vmem:[#allocation11 + $0x250] sm:$0xff] }
  0x48   :  { %4851 = vst [vmem:[#allocation103_spill] sm:$0xff] %v2268_v10  ;;  %4852 = vst [vmem:[#allocation104_spill] sm:$0xff] %v2270_v27  ;;  %v2292_v10 = vld [vmem:[#allocation11 + $0x240] sm:$0xff]  ;;  %v2370_v27 = vmul.f32 %v1936_v23, %v2294_v7 }
  0x49   :  { %4853 = vst [vmem:[#allocation105_spill] sm:$0xff] %v2272_v12  ;;  %4854 = vst [vmem:[#allocation106_spill] sm:$0xff] %v2274_v13  ;;  %v2366_v17 = vmul.f32 %v1936_v23, %v2292_v10  ;;  %v2374_v12 = vmul.f32 %v1936_v23, %v2296_v8 }
  0x4a   :  { %4855 = vst [vmem:[#allocation107_spill] sm:$0xff] %v2282_v5  ;;  %4856 = vst [vmem:[#allocation108_spill] sm:$0xff] %v2286_v4  ;;  %v2316_v4 = vld [vmem:[#allocation11 + $0x260] sm:$0xff]  ;;  %v2318_v5 = vld [vmem:[#allocation11 + $0x268] sm:$0xff] }
  0x4b   :  { %4857 = vst [vmem:[#allocation109_spill] sm:$0xff] %v2290_v3  ;;  %4858 = vst [vmem:[#allocation110_spill] sm:$0xff] %v2292_v10  ;;  %v2314_v3 = vld [vmem:[#allocation11 + $0x258] sm:$0xff]  ;;  %v2388_v10 = vmul.f32 %v1936_v23, %v2316_v4 }
  0x4c   :  { %4859 = vst [vmem:[#allocation111_spill] sm:$0xff] %v2294_v7  ;;  %4860 = vst [vmem:[#allocation112_spill] sm:$0xff] %v2296_v8  ;;  %v2378_v13 = vmul.f32 %v1936_v23, %v2314_v3  ;;  %v2392_v7 = vmul.f32 %v1936_v23, %v2318_v5 }
  0x4d   :  { %4861 = vst [vmem:[#allocation113_spill] sm:$0xff] %v2304_v46  ;;  %4862 = vst [vmem:[#allocation114_spill] sm:$0xff] %v2308_v45  ;;  %v2338_v45 = vld [vmem:[#allocation11 + $0x278] sm:$0xff]  ;;  %v2340_v46 = vld [vmem:[#allocation11 + $0x280] sm:$0xff] }
  0x4e   :  { %4863 = vst [vmem:[#allocation115_spill] sm:$0xff] %v2312_v44  ;;  %4864 = vst [vmem:[#allocation116_spill] sm:$0xff] %v2314_v3  ;;  %v2336_v44 = vld [vmem:[#allocation11 + $0x270] sm:$0xff]  ;;  %v2400_v3 = vmul.f32 %v1936_v23, %v2338_v45 }
  0x4f   :  { %4865 = vst [vmem:[#allocation117_spill] sm:$0xff] %v2316_v4  ;;  %4866 = vst [vmem:[#allocation118_spill] sm:$0xff] %v2318_v5  ;;  %v2396_v8 = vmul.f32 %v1936_v23, %v2336_v44  ;;  %v2410_v4 = vmul.f32 %v1936_v23, %v2340_v46 }
  0x50   :  { %4867 = vst [vmem:[#allocation119_spill] sm:$0xff] %v2326_v53  ;;  %4868 = vst [vmem:[#allocation120_spill] sm:$0xff] %v2330_v52  ;;  %v2360_v52 = vld [vmem:[#allocation11 + $0x290] sm:$0xff]  ;;  %v2362_v53 = vld [vmem:[#allocation11 + $0x298] sm:$0xff] }
  0x51   :  { %4869 = vst [vmem:[#allocation121_spill] sm:$0xff] %v2334_v62  ;;  %4870 = vst [vmem:[#allocation122_spill] sm:$0xff] %v2336_v44  ;;  %v2358_v62 = vld [vmem:[#allocation11 + $0x288] sm:$0xff]  ;;  %v2418_v44 = vmul.f32 %v1936_v23, %v2360_v52 }
  0x52   :  { %4871 = vst [vmem:[#allocation123_spill] sm:$0xff] %v2338_v45  ;;  %4872 = vst [vmem:[#allocation124_spill] sm:$0xff] %v2340_v46  ;;  %v2414_v5 = vmul.f32 %v1936_v23, %v2358_v62  ;;  %v2422_v45 = vmul.f32 %v1936_v23, %v2362_v53 }
  0x53   :  { %4873 = vst [vmem:[#allocation125_spill] sm:$0xff] %v2348_v60  ;;  %4874 = vst [vmem:[#allocation126_spill] sm:$0xff] %v2352_v19  ;;  %v2382_v19 = vld [vmem:[#allocation11 + $0x2a8] sm:$0xff]  ;;  %v2384_v60 = vld [vmem:[#allocation11 + $0x2b0] sm:$0xff] }
  0x54   :  { %4875 = vst [vmem:[#allocation127_spill] sm:$0xff] %v2356_v16  ;;  %4876 = vst [vmem:[#allocation128_spill] sm:$0xff] %v2358_v62  ;;  %v2380_v16 = vld [vmem:[#allocation11 + $0x2a0] sm:$0xff]  ;;  %v2436_v62 = vmul.f32 %v1936_v23, %v2382_v19 }
  0x55   :  { %4877 = vst [vmem:[#allocation129_spill] sm:$0xff] %v2360_v52  ;;  %4878 = vst [vmem:[#allocation130_spill] sm:$0xff] %v2362_v53  ;;  %v2432_v46 = vmul.f32 %v1936_v23, %v2380_v16  ;;  %v2440_v52 = vmul.f32 %v1936_v23, %v2384_v60 }
  0x56   :  { %4879 = vst [vmem:[#allocation131_spill] sm:$0xff] %v2370_v27  ;;  %4880 = vst [vmem:[#allocation132_spill] sm:$0xff] %v2374_v12  ;;  %v2404_v12 = vld [vmem:[#allocation11 + $0x2c0] sm:$0xff]  ;;  %v2406_v27 = vld [vmem:[#allocation11 + $0x2c8] sm:$0xff] }
  0x57   :  { %4881 = vst [vmem:[#allocation133_spill] sm:$0xff] %v2378_v13  ;;  %4882 = vst [vmem:[#allocation134_spill] sm:$0xff] %v2380_v16  ;;  %v2402_v13 = vld [vmem:[#allocation11 + $0x2b8] sm:$0xff]  ;;  %v2454_v16 = vmul.f32 %v1936_v23, %v2404_v12 }
  0x58   :  { %4883 = vst [vmem:[#allocation135_spill] sm:$0xff] %v2382_v19  ;;  %4884 = vst [vmem:[#allocation136_spill] sm:$0xff] %v2384_v60  ;;  %v2444_v53 = vmul.f32 %v1936_v23, %v2402_v13  ;;  %v2458_v19 = vmul.f32 %v1936_v23, %v2406_v27 }
  0x59   :  { %4885 = vst [vmem:[#allocation137_spill] sm:$0xff] %v2392_v7  ;;  %4886 = vst [vmem:[#allocation138_spill] sm:$0xff] %v2396_v8  ;;  %v2426_v8 = vld [vmem:[#allocation11 + $0x2d8] sm:$0xff]  ;;  %v2428_v7 = vld [vmem:[#allocation11 + $0x2e0] sm:$0xff] }
  0x5a   :  { %4887 = vst [vmem:[#allocation139_spill] sm:$0xff] %v2400_v3  ;;  %4888 = vst [vmem:[#allocation140_spill] sm:$0xff] %v2402_v13  ;;  %v2424_v3 = vld [vmem:[#allocation11 + $0x2d0] sm:$0xff]  ;;  %v2466_v13 = vmul.f32 %v1936_v23, %v2426_v8 }
  0x5b   :  { %4889 = vst [vmem:[#allocation141_spill] sm:$0xff] %v2404_v12  ;;  %4890 = vst [vmem:[#allocation142_spill] sm:$0xff] %v2406_v27  ;;  %v2462_v60 = vmul.f32 %v1936_v23, %v2424_v3 }
  0x5c   :  { %4891 = vst [vmem:[#allocation143_spill] sm:$0xff] %v2414_v5  ;;  %4892 = vst [vmem:[#allocation144_spill] sm:$0xff] %v2418_v44  ;;  %v2448_v44 = vld [vmem:[#allocation11 + $0x2f0] sm:$0xff]  ;;  %v2450_v5 = vld [vmem:[#allocation11 + $0x2f8] sm:$0xff] }
  0x5d   :  { %4893 = vst [vmem:[#allocation145_spill] sm:$0xff] %v2422_v45  ;;  %4894 = vst [vmem:[#allocation146_spill] sm:$0xff] %v2424_v3  ;;  %v2446_v45 = vld [vmem:[#allocation11 + $0x2e8] sm:$0xff]  ;;  %v2480_v27 = vmul.f32 %v1936_v23, %v2448_v44  ;;  %v2484_v3 = vmul.f32 %v1936_v23, %v2450_v5 }
  0x5e   :  { %4895 = vst [vmem:[#allocation147_spill] sm:$0xff] %v2426_v8  ;;  %4896 = vst [vmem:[#allocation148_spill] sm:$0xff] %v2428_v7  ;;  %v2476_v12 = vmul.f32 %v1936_v23, %v2446_v45  ;;  %v4905_v8 = vstv %s4563_s3 }
  0x5f   :  { %4897 = vst [vmem:[#allocation149_spill] sm:$0xff] %v2436_v62  ;;  %4898 = vst [vmem:[#allocation150_spill] sm:$0xff] %v2440_v52  ;;  %v1011_v52 = vld [vmem:[#allocation11 + $0x308] sm:$0xff]  ;;  %v2472_v62 = vmul.f32 %v1936_v23, %v2428_v7 }
  0x60   :  { %4899 = vst [vmem:[#allocation151_spill] sm:$0xff] %v2444_v53  ;;  %4900 = vst [vmem:[#allocation152_spill] sm:$0xff] %v2446_v45  ;;  %v2468_v53 = vld [vmem:[#allocation11 + $0x300] sm:$0xff]  ;;  %v2492_v7 = vsel %vm1014_vm0, %v1011_v52, %v4905_v8  ;;  %v2512_v8 = vadd.f32 %v1938_v24, %v1965_v33  ;;  %v2532_v33 = vadd.f32 %v1938_v24, %v1993_v42 }
  0x61   :  { %4901 = vst [vmem:[#allocation153_spill] sm:$0xff] %v2448_v44  ;;  %4902 = vst [vmem:[#allocation154_spill] sm:$0xff] %v2450_v5  ;;  %v2496_v45 = vmul.f32 %v1936_v23, %v2468_v53  ;;  %v2500_v44 = vadd.f32 %v1938_v24, %v1957_v31  ;;  %v2504_v5 = vadd.f32 %v1938_v24, %v1961_v32 }
  0x62   :  { %4903 = vst [vmem:[#allocation155_spill] sm:$0xff] %v2468_v53  ;;  %4904 = vst [vmem:[#allocation156_spill] sm:$0xff] %v2484_v3  ;;  %v2508_v3 = vmul.f32 %v1936_v23, %v2492_v7  ;;  %v2520_v31 = vadd.f32 %v1938_v24, %v1981_v39  ;;  %v2524_v32 = vadd.f32 %v1938_v24, %v1985_v40  ;;  %v4912_v53 = vld [vmem:[#allocation73_spill] sm:$0xff] }
  0x63   :  { %4906 = vst [vmem:[#allocation157_spill] sm:$0xff] %v2492_v7  ;;  %v2528_v23 = vadd.f32 %v1938_v24, %v1989_v41  ;;  %v2540_v39 = vadd.f32 %v1938_v24, %v2009_v48  ;;  %v2544_v40 = vadd.f32 %v1938_v24, %v2013_v49  ;;  %v2548_v41 = vadd.f32 %v1938_v24, %v2017_v50  ;;  %v4911_v7 = vld [vmem:[#allocation72_spill] sm:$0xff] }
  0x64   :  { %v2552_v42 = vadd.f32 %v1938_v24, %v2029_v55  ;;  %v2560_v48 = vadd.f32 %v1938_v24, %v2037_v57  ;;  %v2564_v49 = vadd.f32 %v1938_v24, %v2041_v58  ;;  %v2568_v50 = vadd.f32 %v1938_v24, %v2053_v63 }
  0x65   :  { %v2572_v52 = vadd.f32 %v1938_v24, %v2057_v1  ;;  %v2576_v55 = vadd.f32 %v1938_v24, %v2061_v0  ;;  %v2584_v57 = vadd.f32 %v1938_v24, %v2077_v20  ;;  %v2588_v58 = vadd.f32 %v1938_v24, %v2081_v21  ;;  %v4909_v1 = vld [vmem:[#allocation71_spill] sm:$0xff] }
  0x66   :  { %v2592_v63 = vadd.f32 %v1938_v24, %v2085_v22  ;;  %v2596_v0 = vadd.f32 %v1938_v24, %v2089_v15  ;;  %v2604_v20 = vadd.f32 %v1938_v24, %v2105_v29  ;;  %v2608_v21 = vadd.f32 %v1938_v24, %v2109_v30 }
  0x67   :  { %v2612_v22 = vadd.f32 %v1938_v24, %v2113_v11  ;;  %v2616_v15 = vadd.f32 %v1938_v24, %v2123_v35  ;;  %v2624_v29 = vadd.f32 %v1938_v24, %v2131_v37  ;;  %v2628_v30 = vadd.f32 %v1938_v24, %v2135_v38 }
  0x68   :  { %v2632_v11 = vadd.f32 %v1938_v24, %v2145_v43  ;;  %v2636_v35 = vadd.f32 %v1938_v24, %v4909_v1  ;;  %v2640_v36 = vadd.f32 %v1938_v24, %v4911_v7  ;;  %v2644_v37 = vadd.f32 %v1938_v24, %v4912_v53 }
  0x69   :  { %4907 = vst [vmem:[#allocation158_spill] sm:$0xff] %v2628_v30  ;;  %v2648_v38 = vadd.f32 %v1938_v24, %v2167_v51  ;;  %v4915_v30 = vld [vmem:[#allocation77_spill] sm:$0xff]  ;;  %v2664_v53 = vadd.f32 %v1938_v24, %v2189_v59 }
  0x6a   :  { %4908 = vst [vmem:[#allocation159_spill] sm:$0xff] %v2632_v11  ;;  %4910 = vst [vmem:[#allocation71_spill] sm:$0xff] %v2636_v35  ;;  %v2652_v43 = vadd.f32 %v1938_v24, %v4915_v30  ;;  %v4917_v11 = vld [vmem:[#allocation78_spill] sm:$0xff]  ;;  %v4918_v35 = vld [vmem:[#allocation79_spill] sm:$0xff] }
  0x6b   :  { %4913 = vst [vmem:[#allocation72_spill] sm:$0xff] %v2644_v37  ;;  %4914 = vst [vmem:[#allocation73_spill] sm:$0xff] %v2648_v38  ;;  %v2656_v1 = vadd.f32 %v1938_v24, %v4917_v11  ;;  %v2660_v7 = vadd.f32 %v1938_v24, %v4918_v35  ;;  %v4921_v37 = vld [vmem:[#allocation83_spill] sm:$0xff]  ;;  %v4923_v38 = vld [vmem:[#allocation84_spill] sm:$0xff]  ;;  %v2680_v35 = vadd.f32 %v1938_v24, %v2211_v25 }
  0x6c   :  { %4916 = vst [vmem:[#allocation77_spill] sm:$0xff] %v2652_v43  ;;  %4920 = vst [vmem:[#allocation79_spill] sm:$0xff] %v2664_v53  ;;  %v2668_v51 = vadd.f32 %v1938_v24, %v4921_v37  ;;  %v2672_v30 = vadd.f32 %v1938_v24, %v4923_v38  ;;  %v4924_v43 = vld [vmem:[#allocation85_spill] sm:$0xff]  ;;  %v4929_v53 = vld [vmem:[#allocation90_spill] sm:$0xff] }
  0x6d   :  { %4919 = vst [vmem:[#allocation78_spill] sm:$0xff] %v2660_v7  ;;  %v2676_v11 = vadd.f32 %v1938_v24, %v4924_v43  ;;  %4926 = vst [vmem:[#allocation85_spill] sm:$0xff] %v2680_v35  ;;  %v4927_v7 = vld [vmem:[#allocation89_spill] sm:$0xff]  ;;  %v2688_v37 = vadd.f32 %v1938_v24, %v4929_v53  ;;  %v2696_v43 = vadd.f32 %v1938_v24, %v2233_v14  ;;  %v4935_v35 = vld [vmem:[#allocation96_spill] sm:$0xff] }
  0x6e   :  { %4922 = vst [vmem:[#allocation83_spill] sm:$0xff] %v2668_v51  ;;  %v2684_v59 = vadd.f32 %v1938_v24, %v4927_v7  ;;  %v4930_v51 = vld [vmem:[#allocation91_spill] sm:$0xff]  ;;  %v2704_v7 = vadd.f32 %v1938_v24, %v4935_v35 }
  0x6f   :  { %4925 = vst [vmem:[#allocation84_spill] sm:$0xff] %v2676_v11  ;;  %v2692_v38 = vadd.f32 %v1938_v24, %v4930_v51  ;;  %4932 = vst [vmem:[#allocation91_spill] sm:$0xff] %v2696_v43  ;;  %v4933_v11 = vld [vmem:[#allocation95_spill] sm:$0xff]  ;;  %v2712_v51 = vadd.f32 %v1938_v24, %v2256_v9  ;;  %v4941_v43 = vld [vmem:[#allocation102_spill] sm:$0xff] }
  0x70   :  { %4928 = vst [vmem:[#allocation89_spill] sm:$0xff] %v2684_v59  ;;  %v2700_v25 = vadd.f32 %v1938_v24, %v4933_v11  ;;  %v4936_v59 = vld [vmem:[#allocation97_spill] sm:$0xff]  ;;  %v2720_v11 = vadd.f32 %v1938_v24, %v4941_v43 }
  0x71   :  { %4931 = vst [vmem:[#allocation90_spill] sm:$0xff] %v2692_v38  ;;  %v2708_v53 = vadd.f32 %v1938_v24, %v4936_v59  ;;  %4938 = vst [vmem:[#allocation97_spill] sm:$0xff] %v2712_v51  ;;  %v4939_v38 = vld [vmem:[#allocation101_spill] sm:$0xff]  ;;  %v2728_v59 = vadd.f32 %v1938_v24, %v2278_v6  ;;  %v4947_v51 = vld [vmem:[#allocation108_spill] sm:$0xff] }
  0x72   :  { %4934 = vst [vmem:[#allocation95_spill] sm:$0xff] %v2700_v25  ;;  %v2716_v14 = vadd.f32 %v1938_v24, %v4939_v38  ;;  %v4942_v25 = vld [vmem:[#allocation103_spill] sm:$0xff]  ;;  %v2736_v38 = vadd.f32 %v1938_v24, %v4947_v51 }
  0x73   :  { %4937 = vst [vmem:[#allocation96_spill] sm:$0xff] %v2708_v53  ;;  %v2724_v35 = vadd.f32 %v1938_v24, %v4942_v25  ;;  %4944 = vst [vmem:[#allocation103_spill] sm:$0xff] %v2728_v59  ;;  %v4945_v53 = vld [vmem:[#allocation107_spill] sm:$0xff]  ;;  %v2744_v25 = vadd.f32 %v1938_v24, %v2300_v2  ;;  %v4953_v59 = vld [vmem:[#allocation114_spill] sm:$0xff] }
  0x74   :  { %4940 = vst [vmem:[#allocation101_spill] sm:$0xff] %v2716_v14  ;;  %v2732_v9 = vadd.f32 %v1938_v24, %v4945_v53  ;;  %v4948_v14 = vld [vmem:[#allocation109_spill] sm:$0xff]  ;;  %v2752_v53 = vadd.f32 %v1938_v24, %v4953_v59 }
  0x75   :  { %4943 = vst [vmem:[#allocation102_spill] sm:$0xff] %v2724_v35  ;;  %v2740_v43 = vadd.f32 %v1938_v24, %v4948_v14  ;;  %4950 = vst [vmem:[#allocation109_spill] sm:$0xff] %v2744_v25  ;;  %v4951_v35 = vld [vmem:[#allocation113_spill] sm:$0xff]  ;;  %v2760_v14 = vadd.f32 %v1938_v24, %v2322_v54  ;;  %v4959_v25 = vld [vmem:[#allocation120_spill] sm:$0xff] }
  0x76   :  { %4946 = vst [vmem:[#allocation107_spill] sm:$0xff] %v2732_v9  ;;  %v2748_v6 = vadd.f32 %v1938_v24, %v4951_v35  ;;  %v4954_v9 = vld [vmem:[#allocation115_spill] sm:$0xff]  ;;  %v2768_v35 = vadd.f32 %v1938_v24, %v4959_v25 }
  0x77   :  { %4949 = vst [vmem:[#allocation108_spill] sm:$0xff] %v2740_v43  ;;  %v2756_v51 = vadd.f32 %v1938_v24, %v4954_v9  ;;  %4956 = vst [vmem:[#allocation115_spill] sm:$0xff] %v2760_v14  ;;  %v4957_v43 = vld [vmem:[#allocation119_spill] sm:$0xff]  ;;  %v2776_v9 = vadd.f32 %v1938_v24, %v2344_v61  ;;  %v4965_v14 = vld [vmem:[#allocation126_spill] sm:$0xff] }
  0x78   :  { %4952 = vst [vmem:[#allocation113_spill] sm:$0xff] %v2748_v6  ;;  %v2764_v2 = vadd.f32 %v1938_v24, %v4957_v43  ;;  %v4960_v6 = vld [vmem:[#allocation121_spill] sm:$0xff]  ;;  %v2784_v43 = vadd.f32 %v1938_v24, %v4965_v14 }
  0x79   :  { %4955 = vst [vmem:[#allocation114_spill] sm:$0xff] %v2756_v51  ;;  %v2772_v59 = vadd.f32 %v1938_v24, %v4960_v6  ;;  %4962 = vst [vmem:[#allocation121_spill] sm:$0xff] %v2776_v9  ;;  %v4963_v51 = vld [vmem:[#allocation125_spill] sm:$0xff]  ;;  %v2792_v6 = vadd.f32 %v1938_v24, %v2366_v17  ;;  %v4971_v9 = vld [vmem:[#allocation132_spill] sm:$0xff] }
  0x7a   :  { %4958 = vst [vmem:[#allocation119_spill] sm:$0xff] %v2764_v2  ;;  %v2780_v54 = vadd.f32 %v1938_v24, %v4963_v51  ;;  %v4966_v2 = vld [vmem:[#allocation127_spill] sm:$0xff]  ;;  %v2800_v51 = vadd.f32 %v1938_v24, %v4971_v9 }
  0x7b   :  { %4961 = vst [vmem:[#allocation120_spill] sm:$0xff] %v2772_v59  ;;  %v2788_v25 = vadd.f32 %v1938_v24, %v4966_v2  ;;  %4968 = vst [vmem:[#allocation127_spill] sm:$0xff] %v2792_v6  ;;  %v4969_v59 = vld [vmem:[#allocation131_spill] sm:$0xff]  ;;  %v2808_v2 = vadd.f32 %v1938_v24, %v2388_v10  ;;  %v4977_v6 = vld [vmem:[#allocation138_spill] sm:$0xff] }
  0x7c   :  { %4964 = vst [vmem:[#allocation125_spill] sm:$0xff] %v2780_v54  ;;  %v2796_v61 = vadd.f32 %v1938_v24, %v4969_v59  ;;  %v4972_v54 = vld [vmem:[#allocation133_spill] sm:$0xff]  ;;  %v2816_v59 = vadd.f32 %v1938_v24, %v4977_v6 }
  0x7d   :  { %4967 = vst [vmem:[#allocation126_spill] sm:$0xff] %v2788_v25  ;;  %v2804_v14 = vadd.f32 %v1938_v24, %v4972_v54  ;;  %4974 = vst [vmem:[#allocation133_spill] sm:$0xff] %v2808_v2  ;;  %v4975_v25 = vld [vmem:[#allocation137_spill] sm:$0xff]  ;;  %v2824_v54 = vadd.f32 %v1938_v24, %v2410_v4  ;;  %v4983_v2 = vld [vmem:[#allocation144_spill] sm:$0xff] }
  0x7e   :  { %4970 = vst [vmem:[#allocation131_spill] sm:$0xff] %v2796_v61  ;;  %v2812_v17 = vadd.f32 %v1938_v24, %v4975_v25  ;;  %v4978_v61 = vld [vmem:[#allocation139_spill] sm:$0xff]  ;;  %v2832_v25 = vadd.f32 %v1938_v24, %v4983_v2 }
  0x7f   :  { %4973 = vst [vmem:[#allocation132_spill] sm:$0xff] %v2804_v14  ;;  %v2820_v9 = vadd.f32 %v1938_v24, %v4978_v61  ;;  %4980 = vst [vmem:[#allocation139_spill] sm:$0xff] %v2824_v54  ;;  %v4981_v14 = vld [vmem:[#allocation143_spill] sm:$0xff]  ;;  %v2840_v61 = vadd.f32 %v1938_v24, %v2432_v46  ;;  %v4986_v54 = vld [vmem:[#allocation150_spill] sm:$0xff]  ;;  %v2860_v46 = vadd.f32 %v1938_v24, %v2458_v19 }
  0x80   :  { %4976 = vst [vmem:[#allocation137_spill] sm:$0xff] %v2812_v17  ;;  %v2828_v10 = vadd.f32 %v1938_v24, %v4981_v14  ;;  %v4984_v17 = vld [vmem:[#allocation145_spill] sm:$0xff]  ;;  %v2848_v14 = vadd.f32 %v1938_v24, %v4986_v54  ;;  %v2868_v54 = vadd.f32 %v1938_v24, %v2466_v13  ;;  %v2880_v19 = vadd.f32 %v1938_v24, %v2480_v27 }
  0x81   :  { %4979 = vst [vmem:[#allocation138_spill] sm:$0xff] %v2820_v9  ;;  %v2836_v6 = vadd.f32 %v1938_v24, %v4984_v17  ;;  %v4985_v9 = vld [vmem:[#allocation149_spill] sm:$0xff]  ;;  %v2856_v17 = vadd.f32 %v1938_v24, %v2454_v16  ;;  %4988 = vst [vmem:[#allocation144_spill] sm:$0xff] %v2860_v46  ;;  %v2876_v16 = vadd.f32 %v1938_v24, %v2476_v12  ;;  %v4992_v46 = vld [vmem:[#allocation156_spill] sm:$0xff] }
  0x82   :  { %4982 = vst [vmem:[#allocation143_spill] sm:$0xff] %v2828_v10  ;;  %v2844_v4 = vadd.f32 %v1938_v24, %v4985_v9  ;;  %v4987_v10 = vld [vmem:[#allocation151_spill] sm:$0xff]  ;;  %v2864_v9 = vadd.f32 %v1938_v24, %v2462_v60  ;;  %4991 = vst [vmem:[#allocation150_spill] sm:$0xff] %v2880_v19  ;;  %v2884_v60 = vadd.f32 %v1938_v24, %v4992_v46  ;;  %v4997_v19 = vld [vmem:[#allocation17_spill] sm:$0xff] }
  0x83   :  { %v2852_v2 = vadd.f32 %v1938_v24, %v4987_v10  ;;  %v2872_v10 = vadd.f32 %v1938_v24, %v2472_v62  ;;  %4990 = vst [vmem:[#allocation149_spill] sm:$0xff] %v2876_v16  ;;  %v2888_v13 = vadd.f32 %v1938_v24, %v2496_v45  ;;  %v2892_v62 = vadd.f32 %v1938_v24, %v2508_v3  ;;  %v4996_v16 = vld [vmem:[#allocation16_spill] sm:$0xff] }
  0x84   :  { %4993 = vst [vmem:[#allocation151_spill] sm:$0xff] %v2884_v60  ;;  %v2900_v27 = vmul.f32 %v2504_v5, %v4996_v16  ;;  %v2904_v46 = vmul.f32 %v2512_v8, %v4997_v19  ;;  %v4998_v60 = vld [vmem:[#allocation18_spill] sm:$0xff]  ;;  %v5000_v24 = vld [vmem:[#allocation20_spill] sm:$0xff]  ;;  %v5003_v19 = vld [vmem:[#allocation23_spill] sm:$0xff] }
  0x85   :  { %4989 = vst [vmem:[#allocation145_spill] sm:$0xff] %v2872_v10  ;;  %4994 = vst [vmem:[#allocation156_spill] sm:$0xff] %v2888_v13  ;;  %v4995_v10 = vld [vmem:[#allocation15_spill] sm:$0xff]  ;;  %v2908_v45 = vmul.f32 %v2516_v18, %v4998_v60  ;;  %v5002_v16 = vld [vmem:[#allocation22_spill] sm:$0xff]  ;;  %v2928_v18 = vmul.f32 %v2536_v34, %v5003_v19 }
  0x86   :  { %v2896_v12 = vmul.f32 %v2500_v44, %v4995_v10  ;;  %v4999_v13 = vld [vmem:[#allocation19_spill] sm:$0xff]  ;;  %v2916_v44 = vmul.f32 %v2524_v32, %v5000_v24  ;;  %v5001_v10 = vld [vmem:[#allocation21_spill] sm:$0xff]  ;;  %v2924_v8 = vmul.f32 %v2532_v33, %v5002_v16  ;;  %v5004_v60 = vld [vmem:[#allocation24_spill] sm:$0xff] }
  0x87   :  { %v2912_v3 = vmul.f32 %v2520_v31, %v4999_v13  ;;  %v2920_v5 = vmul.f32 %v2528_v23, %v5001_v10  ;;  %v2932_v31 = vmul.f32 %v2540_v39, %v5004_v60  ;;  %v5005_v13 = vld [vmem:[#allocation25_spill] sm:$0xff]  ;;  %v5006_v24 = vld [vmem:[#allocation26_spill] sm:$0xff]  ;;  %v5007_v10 = vld [vmem:[#allocation27_spill] sm:$0xff] }
  0x88   :  { %v2936_v32 = vmul.f32 %v2544_v40, %v5005_v13  ;;  %v2940_v23 = vmul.f32 %v2548_v41, %v5006_v24  ;;  %v2944_v33 = vmul.f32 %v2552_v42, %v5007_v10  ;;  %v5008_v16 = vld [vmem:[#allocation28_spill] sm:$0xff]  ;;  %v5009_v19 = vld [vmem:[#allocation29_spill] sm:$0xff]  ;;  %v5010_v60 = vld [vmem:[#allocation30_spill] sm:$0xff] }
  0x89   :  { %v2948_v34 = vmul.f32 %v2556_v47, %v5008_v16  ;;  %v2952_v39 = vmul.f32 %v2560_v48, %v5009_v19  ;;  %v2956_v40 = vmul.f32 %v2564_v49, %v5010_v60  ;;  %v5011_v13 = vld [vmem:[#allocation31_spill] sm:$0xff]  ;;  %v5012_v24 = vld [vmem:[#allocation32_spill] sm:$0xff]  ;;  %v5013_v10 = vld [vmem:[#allocation33_spill] sm:$0xff] }
  0x8a   :  { %v2960_v41 = vmul.f32 %v2568_v50, %v5011_v13  ;;  %v2964_v42 = vmul.f32 %v2572_v52, %v5012_v24  ;;  %v2968_v47 = vmul.f32 %v2576_v55, %v5013_v10  ;;  %v5014_v16 = vld [vmem:[#allocation34_spill] sm:$0xff]  ;;  %v5015_v19 = vld [vmem:[#allocation37_spill] sm:$0xff]  ;;  %v5017_v13 = vld [vmem:[#allocation39_spill] sm:$0xff] }
  0x8b   :  { %v2972_v48 = vmul.f32 %v2580_v56, %v5014_v16  ;;  %v2976_v49 = vmul.f32 %v2584_v57, %v5015_v19  ;;  %v5016_v60 = vld [vmem:[#allocation38_spill] sm:$0xff]  ;;  %v2984_v52 = vmul.f32 %v2592_v63, %v5017_v13  ;;  %v5018_v24 = vld [vmem:[#allocation40_spill] sm:$0xff]  ;;  %v5019_v10 = vld [vmem:[#allocation41_spill] sm:$0xff] }
  0x8c   :  { %v2980_v50 = vmul.f32 %v2588_v58, %v5016_v60  ;;  %v2988_v55 = vmul.f32 %v2596_v0, %v5018_v24  ;;  %v2992_v56 = vmul.f32 %v2600_v26, %v5019_v10  ;;  %v5020_v16 = vld [vmem:[#allocation42_spill] sm:$0xff]  ;;  %v5022_v19 = vld [vmem:[#allocation43_spill] sm:$0xff]  ;;  %v5024_v60 = vld [vmem:[#allocation44_spill] sm:$0xff] }
  0x8d   :  { %v2996_v57 = vmul.f32 %v2604_v20, %v5020_v16  ;;  %v3000_v58 = vmul.f32 %v2608_v21, %v5022_v19  ;;  %v3004_v63 = vmul.f32 %v2612_v22, %v5024_v60  ;;  %v5026_v13 = vld [vmem:[#allocation45_spill] sm:$0xff]  ;;  %v5027_v24 = vld [vmem:[#allocation46_spill] sm:$0xff]  ;;  %v5029_v10 = vld [vmem:[#allocation47_spill] sm:$0xff] }
  0x8e   :  { %v3008_v0 = vmul.f32 %v2616_v15, %v5026_v13  ;;  %v3012_v26 = vmul.f32 %v2620_v28, %v5027_v24  ;;  %v3016_v20 = vmul.f32 %v2624_v29, %v5029_v10  ;;  %v5031_v16 = vld [vmem:[#allocation48_spill] sm:$0xff]  ;;  %v5034_v19 = vld [vmem:[#allocation49_spill] sm:$0xff]  ;;  %v5036_v60 = vld [vmem:[#allocation50_spill] sm:$0xff] }
  0x8f   :  { %5021 = vst [vmem:[#allocation160_spill] sm:$0xff] %v2996_v57  ;;  %5023 = vst [vmem:[#allocation161_spill] sm:$0xff] %v3000_v58  ;;  %v5032_v57 = vld [vmem:[#allocation158_spill] sm:$0xff]  ;;  %v5035_v58 = vld [vmem:[#allocation159_spill] sm:$0xff] }
  0x90   :  { %5025 = vst [vmem:[#allocation162_spill] sm:$0xff] %v3004_v63  ;;  %5028 = vst [vmem:[#allocation163_spill] sm:$0xff] %v3012_v26  ;;  %v3020_v21 = vmul.f32 %v5032_v57, %v5031_v16  ;;  %v3024_v22 = vmul.f32 %v5035_v58, %v5034_v19  ;;  %v5037_v63 = vld [vmem:[#allocation71_spill] sm:$0xff]  ;;  %v5041_v24 = vld [vmem:[#allocation52_spill] sm:$0xff] }
  0x91   :  { %5030 = vst [vmem:[#allocation164_spill] sm:$0xff] %v3016_v20  ;;  %v3028_v15 = vmul.f32 %v5037_v63, %v5036_v60  ;;  %v5039_v13 = vld [vmem:[#allocation51_spill] sm:$0xff]  ;;  %v5042_v26 = vld [vmem:[#allocation72_spill] sm:$0xff]  ;;  %v5044_v10 = vld [vmem:[#allocation53_spill] sm:$0xff] }
  0x92   :  { %5033 = vst [vmem:[#allocation158_spill] sm:$0xff] %v3020_v21  ;;  %v3032_v28 = vmul.f32 %v2640_v36, %v5039_v13  ;;  %v3036_v29 = vmul.f32 %v5042_v26, %v5041_v24  ;;  %v5045_v20 = vld [vmem:[#allocation73_spill] sm:$0xff]  ;;  %v5046_v16 = vld [vmem:[#allocation54_spill] sm:$0xff]  ;;  %v5049_v19 = vld [vmem:[#allocation55_spill] sm:$0xff] }
  0x93   :  { %5038 = vst [vmem:[#allocation159_spill] sm:$0xff] %v3028_v15  ;;  %v3040_v57 = vmul.f32 %v5045_v20, %v5044_v10  ;;  %v5047_v21 = vld [vmem:[#allocation77_spill] sm:$0xff]  ;;  %v3048_v63 = vmul.f32 %v2656_v1, %v5049_v19  ;;  %v5051_v60 = vld [vmem:[#allocation56_spill] sm:$0xff]  ;;  %v5052_v15 = vld [vmem:[#allocation78_spill] sm:$0xff] }
  0x94   :  { %5040 = vst [vmem:[#allocation71_spill] sm:$0xff] %v3032_v28  ;;  %5043 = vst [vmem:[#allocation72_spill] sm:$0xff] %v3036_v29  ;;  %v3044_v58 = vmul.f32 %v5047_v21, %v5046_v16  ;;  %v3052_v36 = vmul.f32 %v5052_v15, %v5051_v60  ;;  %v5054_v13 = vld [vmem:[#allocation57_spill] sm:$0xff]  ;;  %v5055_v28 = vld [vmem:[#allocation79_spill] sm:$0xff] }
  0x95   :  { %5050 = vst [vmem:[#allocation77_spill] sm:$0xff] %v3048_v63  ;;  %v3056_v26 = vmul.f32 %v5055_v28, %v5054_v13  ;;  %v5056_v24 = vld [vmem:[#allocation58_spill] sm:$0xff]  ;;  %v5057_v29 = vld [vmem:[#allocation83_spill] sm:$0xff]  ;;  %v5061_v16 = vld [vmem:[#allocation60_spill] sm:$0xff] }
  0x96   :  { %5048 = vst [vmem:[#allocation73_spill] sm:$0xff] %v3044_v58  ;;  %5053 = vst [vmem:[#allocation78_spill] sm:$0xff] %v3052_v36  ;;  %v3060_v20 = vmul.f32 %v5057_v29, %v5056_v24  ;;  %v5059_v10 = vld [vmem:[#allocation59_spill] sm:$0xff]  ;;  %v5062_v58 = vld [vmem:[#allocation84_spill] sm:$0xff] }
  0x97   :  { %v3064_v21 = vmul.f32 %v2672_v30, %v5059_v10  ;;  %v3068_v1 = vmul.f32 %v5062_v58, %v5061_v16  ;;  %v5064_v19 = vld [vmem:[#allocation61_spill] sm:$0xff]  ;;  %v5066_v60 = vld [vmem:[#allocation62_spill] sm:$0xff]  ;;  %v5069_v13 = vld [vmem:[#allocation63_spill] sm:$0xff] }
  0x98   :  { %5058 = vst [vmem:[#allocation79_spill] sm:$0xff] %v3060_v20  ;;  %v5065_v63 = vld [vmem:[#allocation85_spill] sm:$0xff]  ;;  %v3080_v29 = vmul.f32 %v2688_v37, %v5069_v13  ;;  %v5071_v24 = vld [vmem:[#allocation64_spill] sm:$0xff]  ;;  %v5072_v20 = vld [vmem:[#allocation90_spill] sm:$0xff] }
  0x99   :  { %5060 = vst [vmem:[#allocation83_spill] sm:$0xff] %v3064_v21  ;;  %5063 = vst [vmem:[#allocation84_spill] sm:$0xff] %v3068_v1  ;;  %v3072_v15 = vmul.f32 %v5065_v63, %v5064_v19  ;;  %v5067_v36 = vld [vmem:[#allocation89_spill] sm:$0xff]  ;;  %v3084_v30 = vmul.f32 %v5072_v20, %v5071_v24  ;;  %v5075_v21 = vld [vmem:[#allocation91_spill] sm:$0xff] }
  0x9a   :  { %v3076_v28 = vmul.f32 %v5067_v36, %v5066_v60  ;;  %5070 = vst [vmem:[#allocation89_spill] sm:$0xff] %v3080_v29  ;;  %v5074_v10 = vld [vmem:[#allocation65_spill] sm:$0xff]  ;;  %v5076_v16 = vld [vmem:[#allocation66_spill] sm:$0xff]  ;;  %v5077_v1 = vld [vmem:[#allocation95_spill] sm:$0xff] }
  0x9b   :  { %5073 = vst [vmem:[#allocation90_spill] sm:$0xff] %v3084_v30  ;;  %v3088_v58 = vmul.f32 %v5075_v21, %v5074_v10  ;;  %v3092_v63 = vmul.f32 %v5077_v1, %v5076_v16  ;;  %v5079_v19 = vld [vmem:[#allocation67_spill] sm:$0xff]  ;;  %v5081_v60 = vld [vmem:[#allocation68_spill] sm:$0xff]  ;;  %v5084_v13 = vld [vmem:[#allocation69_spill] sm:$0xff] }
  0x9c   :  { %5068 = vst [vmem:[#allocation85_spill] sm:$0xff] %v3076_v28  ;;  %v3096_v36 = vmul.f32 %v2704_v7, %v5079_v19  ;;  %v5082_v28 = vld [vmem:[#allocation96_spill] sm:$0xff]  ;;  %v5085_v29 = vld [vmem:[#allocation97_spill] sm:$0xff]  ;;  %v5086_v24 = vld [vmem:[#allocation70_spill] sm:$0xff] }
  0x9d   :  { %5078 = vst [vmem:[#allocation91_spill] sm:$0xff] %v3092_v63  ;;  %v3100_v37 = vmul.f32 %v5082_v28, %v5081_v60  ;;  %v3104_v20 = vmul.f32 %v5085_v29, %v5084_v13  ;;  %v5087_v30 = vld [vmem:[#allocation101_spill] sm:$0xff]  ;;  %v5089_v10 = vld [vmem:[#allocation74_spill] sm:$0xff]  ;;  %v5091_v16 = vld [vmem:[#allocation75_spill] sm:$0xff] }
  0x9e   :  { %5080 = vst [vmem:[#allocation95_spill] sm:$0xff] %v3096_v36  ;;  %v3108_v21 = vmul.f32 %v5087_v30, %v5086_v24  ;;  %v3112_v1 = vmul.f32 %v2720_v11, %v5089_v10  ;;  %v5092_v63 = vld [vmem:[#allocation102_spill] sm:$0xff]  ;;  %v5094_v19 = vld [vmem:[#allocation76_spill] sm:$0xff]  ;;  %v5095_v36 = vld [vmem:[#allocation103_spill] sm:$0xff] }
  0x9f   :  { %5083 = vst [vmem:[#allocation96_spill] sm:$0xff] %v3100_v37  ;;  %v3116_v7 = vmul.f32 %v5092_v63, %v5091_v16  ;;  %v3120_v28 = vmul.f32 %v5095_v36, %v5094_v19  ;;  %v5096_v60 = vld [vmem:[#allocation80_spill] sm:$0xff]  ;;  %v5097_v37 = vld [vmem:[#allocation107_spill] sm:$0xff]  ;;  %v5099_v13 = vld [vmem:[#allocation81_spill] sm:$0xff] }
  0xa0   :  { %5088 = vst [vmem:[#allocation97_spill] sm:$0xff] %v3108_v21  ;;  %5090 = vst [vmem:[#allocation101_spill] sm:$0xff] %v3112_v1  ;;  %v3124_v29 = vmul.f32 %v5097_v37, %v5096_v60  ;;  %v3128_v30 = vmul.f32 %v2736_v38, %v5099_v13  ;;  %v5101_v24 = vld [vmem:[#allocation82_spill] sm:$0xff]  ;;  %v5102_v21 = vld [vmem:[#allocation108_spill] sm:$0xff] }
  0xa1   :  { %5093 = vst [vmem:[#allocation102_spill] sm:$0xff] %v3116_v7  ;;  %v3132_v11 = vmul.f32 %v5102_v21, %v5101_v24  ;;  %v5104_v10 = vld [vmem:[#allocation86_spill] sm:$0xff]  ;;  %v5105_v1 = vld [vmem:[#allocation109_spill] sm:$0xff]  ;;  %v5106_v16 = vld [vmem:[#allocation87_spill] sm:$0xff] }
  0xa2   :  { %5098 = vst [vmem:[#allocation103_spill] sm:$0xff] %v3124_v29  ;;  %5100 = vst [vmem:[#allocation107_spill] sm:$0xff] %v3128_v30  ;;  %v3136_v63 = vmul.f32 %v5105_v1, %v5104_v10  ;;  %v5107_v7 = vld [vmem:[#allocation113_spill] sm:$0xff]  ;;  %v5109_v19 = vld [vmem:[#allocation88_spill] sm:$0xff] }
  0xa3   :  { %5103 = vst [vmem:[#allocation108_spill] sm:$0xff] %v3132_v11  ;;  %v3140_v36 = vmul.f32 %v5107_v7, %v5106_v16  ;;  %v3144_v37 = vmul.f32 %v2752_v53, %v5109_v19  ;;  %v5111_v60 = vld [vmem:[#allocation92_spill] sm:$0xff]  ;;  %v5112_v29 = vld [vmem:[#allocation114_spill] sm:$0xff]  ;;  %v5114_v13 = vld [vmem:[#allocation93_spill] sm:$0xff] }
  0xa4   :  { %v3148_v38 = vmul.f32 %v5112_v29, %v5111_v60  ;;  %v5115_v30 = vld [vmem:[#allocation115_spill] sm:$0xff]  ;;  %v5116_v24 = vld [vmem:[#allocation94_spill] sm:$0xff]  ;;  %v5124_v19 = vld [vmem:[#allocation100_spill] sm:$0xff] }
  0xa5   :  { %5108 = vst [vmem:[#allocation109_spill] sm:$0xff] %v3140_v36  ;;  %5110 = vst [vmem:[#allocation113_spill] sm:$0xff] %v3144_v37  ;;  %v3152_v21 = vmul.f32 %v5115_v30, %v5114_v13  ;;  %v5117_v11 = vld [vmem:[#allocation119_spill] sm:$0xff]  ;;  %v5119_v10 = vld [vmem:[#allocation98_spill] sm:$0xff] }
  0xa6   :  { %5113 = vst [vmem:[#allocation114_spill] sm:$0xff] %v3148_v38  ;;  %v3156_v1 = vmul.f32 %v5117_v11, %v5116_v24  ;;  %v3160_v7 = vmul.f32 %v2768_v35, %v5119_v10  ;;  %v5121_v16 = vld [vmem:[#allocation99_spill] sm:$0xff]  ;;  %v5122_v36 = vld [vmem:[#allocation120_spill] sm:$0xff]  ;;  %v5125_v37 = vld [vmem:[#allocation121_spill] sm:$0xff] }
  0xa7   :  { %v3164_v53 = vmul.f32 %v5122_v36, %v5121_v16  ;;  %v3168_v29 = vmul.f32 %v5125_v37, %v5124_v19  ;;  %v5126_v60 = vld [vmem:[#allocation104_spill] sm:$0xff]  ;;  %v5127_v38 = vld [vmem:[#allocation125_spill] sm:$0xff]  ;;  %v5131_v24 = vld [vmem:[#allocation106_spill] sm:$0xff] }
  0xa8   :  { %5118 = vst [vmem:[#allocation115_spill] sm:$0xff] %v3156_v1  ;;  %5120 = vst [vmem:[#allocation119_spill] sm:$0xff] %v3160_v7  ;;  %v3172_v30 = vmul.f32 %v5127_v38, %v5126_v60  ;;  %v5129_v13 = vld [vmem:[#allocation105_spill] sm:$0xff]  ;;  %v5132_v1 = vld [vmem:[#allocation126_spill] sm:$0xff] }
  0xa9   :  { %5123 = vst [vmem:[#allocation120_spill] sm:$0xff] %v3164_v53  ;;  %v3176_v11 = vmul.f32 %v2784_v43, %v5129_v13  ;;  %v3180_v35 = vmul.f32 %v5132_v1, %v5131_v24  ;;  %v5134_v10 = vld [vmem:[#allocation110_spill] sm:$0xff]  ;;  %v5135_v7 = vld [vmem:[#allocation127_spill] sm:$0xff]  ;;  %v5139_v19 = vld [vmem:[#allocation112_spill] sm:$0xff] }
  0xaa   :  { %5128 = vst [vmem:[#allocation121_spill] sm:$0xff] %v3172_v30  ;;  %v3184_v36 = vmul.f32 %v5135_v7, %v5134_v10  ;;  %v5136_v16 = vld [vmem:[#allocation111_spill] sm:$0xff]  ;;  %v3192_v38 = vmul.f32 %v2800_v51, %v5139_v19  ;;  %v5141_v60 = vld [vmem:[#allocation116_spill] sm:$0xff]  ;;  %v5144_v13 = vld [vmem:[#allocation117_spill] sm:$0xff] }
  0xab   :  { %5130 = vst [vmem:[#allocation125_spill] sm:$0xff] %v3176_v11  ;;  %5133 = vst [vmem:[#allocation126_spill] sm:$0xff] %v3180_v35  ;;  %v5137_v53 = vld [vmem:[#allocation131_spill] sm:$0xff]  ;;  %v5142_v30 = vld [vmem:[#allocation132_spill] sm:$0xff] }
  0xac   :  { %v3188_v37 = vmul.f32 %v5137_v53, %v5136_v16  ;;  %5140 = vst [vmem:[#allocation131_spill] sm:$0xff] %v3192_v38  ;;  %v3196_v43 = vmul.f32 %v5142_v30, %v5141_v60  ;;  %v5145_v11 = vld [vmem:[#allocation133_spill] sm:$0xff]  ;;  %v5146_v24 = vld [vmem:[#allocation118_spill] sm:$0xff]  ;;  %v5149_v16 = vld [vmem:[#allocation123_spill] sm:$0xff] }
  0xad   :  { %v3200_v1 = vmul.f32 %v5145_v11, %v5144_v13  ;;  %v5147_v35 = vld [vmem:[#allocation137_spill] sm:$0xff]  ;;  %v5148_v10 = vld [vmem:[#allocation122_spill] sm:$0xff]  ;;  %v5151_v19 = vld [vmem:[#allocation124_spill] sm:$0xff] }
  0xae   :  { %5138 = vst [vmem:[#allocation127_spill] sm:$0xff] %v3188_v37  ;;  %5143 = vst [vmem:[#allocation132_spill] sm:$0xff] %v3196_v43  ;;  %v3204_v7 = vmul.f32 %v5147_v35, %v5146_v24  ;;  %v3208_v53 = vmul.f32 %v2816_v59, %v5148_v10  ;;  %v5150_v37 = vld [vmem:[#allocation138_spill] sm:$0xff]  ;;  %v5152_v38 = vld [vmem:[#allocation139_spill] sm:$0xff] }
  0xaf   :  { %v3212_v51 = vmul.f32 %v5150_v37, %v5149_v16  ;;  %v3216_v30 = vmul.f32 %v5152_v38, %v5151_v19  ;;  %v5153_v60 = vld [vmem:[#allocation128_spill] sm:$0xff]  ;;  %v5154_v43 = vld [vmem:[#allocation143_spill] sm:$0xff]  ;;  %v5155_v13 = vld [vmem:[#allocation129_spill] sm:$0xff] }
  0xb0   :  { %v3220_v11 = vmul.f32 %v5154_v43, %v5153_v60  ;;  %v3224_v35 = vmul.f32 %v2832_v25, %v5155_v13  ;;  %v5156_v24 = vld [vmem:[#allocation130_spill] sm:$0xff]  ;;  %v5159_v16 = vld [vmem:[#allocation135_spill] sm:$0xff]  ;;  %v5160_v19 = vld [vmem:[#allocation136_spill] sm:$0xff] }
  0xb1   :  { %v3228_v59 = vmul.f32 %v2836_v6, %v5156_v24  ;;  %v5158_v10 = vld [vmem:[#allocation134_spill] sm:$0xff]  ;;  %v3236_v38 = vmul.f32 %v2844_v4, %v5159_v16  ;;  %v3240_v43 = vmul.f32 %v2848_v14, %v5160_v19  ;;  %v5162_v60 = vld [vmem:[#allocation140_spill] sm:$0xff]  ;;  %v5164_v13 = vld [vmem:[#allocation141_spill] sm:$0xff] }
  0xb2   :  { %v3232_v37 = vmul.f32 %v2840_v61, %v5158_v10  ;;  %v3244_v25 = vmul.f32 %v2852_v2, %v5162_v60  ;;  %v3248_v6 = vmul.f32 %v2856_v17, %v5164_v13  ;;  %v5166_v24 = vld [vmem:[#allocation142_spill] sm:$0xff]  ;;  %v5171_v16 = vld [vmem:[#allocation147_spill] sm:$0xff]  ;;  %v5172_v19 = vld [vmem:[#allocation148_spill] sm:$0xff] }
  0xb3   :  { %5157 = vst [vmem:[#allocation133_spill] sm:$0xff] %v3228_v59  ;;  %5161 = vst [vmem:[#allocation137_spill] sm:$0xff] %v3240_v43  ;;  %v5167_v59 = vld [vmem:[#allocation144_spill] sm:$0xff]  ;;  %v5169_v10 = vld [vmem:[#allocation146_spill] sm:$0xff]  ;;  %v3260_v14 = vmul.f32 %v2868_v54, %v5171_v16 }
  0xb4   :  { %5163 = vst [vmem:[#allocation138_spill] sm:$0xff] %v3244_v25  ;;  %5165 = vst [vmem:[#allocation139_spill] sm:$0xff] %v3248_v6  ;;  %v3252_v61 = vmul.f32 %v5167_v59, %v5166_v24  ;;  %v3256_v4 = vmul.f32 %v2864_v9, %v5169_v10  ;;  %v5173_v43 = vld [vmem:[#allocation145_spill] sm:$0xff]  ;;  %v5174_v60 = vld [vmem:[#allocation152_spill] sm:$0xff] }
  0xb5   :  { %v3264_v2 = vmul.f32 %v5173_v43, %v5172_v19  ;;  %v5175_v25 = vld [vmem:[#allocation149_spill] sm:$0xff]  ;;  %v5177_v6 = vld [vmem:[#allocation150_spill] sm:$0xff]  ;;  %v5180_v10 = vld [vmem:[#allocation155_spill] sm:$0xff] }
  0xb6   :  { %5168 = vst [vmem:[#allocation143_spill] sm:$0xff] %v3252_v61  ;;  %5170 = vst [vmem:[#allocation144_spill] sm:$0xff] %v3256_v4  ;;  %v3268_v17 = vmul.f32 %v5175_v25, %v5174_v60  ;;  %v5176_v13 = vld [vmem:[#allocation153_spill] sm:$0xff]  ;;  %v5178_v24 = vld [vmem:[#allocation154_spill] sm:$0xff] }
  0xb7   :  { %v3272_v59 = vmul.f32 %v5177_v6, %v5176_v13  ;;  %v5179_v61 = vld [vmem:[#allocation151_spill] sm:$0xff]  ;;  %v5181_v4 = vld [vmem:[#allocation156_spill] sm:$0xff]  ;;  %v5182_v16 = vld [vmem:[#allocation157_spill] sm:$0xff] }
  0xb8   :  { %v3276_v9 = vmul.f32 %v5179_v61, %v5178_v24  ;;  %v3280_v54 = vmul.f32 %v5181_v4, %v5180_v10  ;;  %v3284_v43 = vmul.f32 %v2892_v62, %v5182_v16  ;;  %v5183_v19 = vld [vmem:[#allocation35_spill] sm:$0xff]  ;;  %v5184_v16 = vld [vmem:[#allocation160_spill] sm:$0xff]  ;;  %v5186_v10 = vld [vmem:[#allocation161_spill] sm:$0xff] }
  0xb9   :  { %v3288_v25 = vadd.f32 %v5183_v19, %v2896_v12  ;;  %v3292_v6 = vadd.f32 %v5183_v19, %v2900_v27  ;;  %v3296_v61 = vadd.f32 %v5183_v19, %v2904_v46  ;;  %v3300_v4 = vadd.f32 %v5183_v19, %v2908_v45  ;;  %v5187_v24 = vld [vmem:[#allocation162_spill] sm:$0xff]  ;;  %v5190_v13 = vld [vmem:[#allocation163_spill] sm:$0xff]  ;;  %v5192_v60 = vld [vmem:[#allocation164_spill] sm:$0xff] }
  0xba   :  { %v3304_v62 = vadd.f32 %v5183_v19, %v2912_v3  ;;  %v3308_v12 = vadd.f32 %v5183_v19, %v2916_v44  ;;  %v3312_v27 = vadd.f32 %v5183_v19, %v2920_v5  ;;  %v3316_v46 = vadd.f32 %v5183_v19, %v2924_v8 }
  0xbb   :  { %v3320_v45 = vadd.f32 %v5183_v19, %v2928_v18  ;;  %v3324_v3 = vadd.f32 %v5183_v19, %v2932_v31  ;;  %v3328_v44 = vadd.f32 %v5183_v19, %v2936_v32  ;;  %v3332_v5 = vadd.f32 %v5183_v19, %v2940_v23 }
  0xbc   :  { %v3336_v8 = vadd.f32 %v5183_v19, %v2944_v33  ;;  %v3340_v18 = vadd.f32 %v5183_v19, %v2948_v34  ;;  %v3344_v31 = vadd.f32 %v5183_v19, %v2952_v39  ;;  %v3348_v32 = vadd.f32 %v5183_v19, %v2956_v40 }
  0xbd   :  { %v3352_v23 = vadd.f32 %v5183_v19, %v2960_v41  ;;  %v3356_v33 = vadd.f32 %v5183_v19, %v2964_v42  ;;  %v3360_v34 = vadd.f32 %v5183_v19, %v2968_v47  ;;  %v3364_v39 = vadd.f32 %v5183_v19, %v2972_v48 }
  0xbe   :  { %v3368_v40 = vadd.f32 %v5183_v19, %v2976_v49  ;;  %v3372_v41 = vadd.f32 %v5183_v19, %v2980_v50  ;;  %v3376_v42 = vadd.f32 %v5183_v19, %v2984_v52  ;;  %v3380_v47 = vadd.f32 %v5183_v19, %v2988_v55 }
  0xbf   :  { %v3384_v48 = vadd.f32 %v5183_v19, %v2992_v56  ;;  %v3388_v49 = vadd.f32 %v5183_v19, %v5184_v16  ;;  %v3392_v50 = vadd.f32 %v5183_v19, %v5186_v10  ;;  %v3396_v52 = vadd.f32 %v5183_v19, %v5187_v24 }
  0xc0   :  { %v3400_v55 = vadd.f32 %v5183_v19, %v3008_v0  ;;  %v3404_v56 = vadd.f32 %v5183_v19, %v5190_v13  ;;  %v3408_v16 = vadd.f32 %v5183_v19, %v5192_v60  ;;  %v3416_v24 = vadd.f32 %v5183_v19, %v3024_v22 }
  0xc1   :  { %5185 = vst [vmem:[#allocation145_spill] sm:$0xff] %v3388_v49  ;;  %5188 = vst [vmem:[#allocation149_spill] sm:$0xff] %v3396_v52  ;;  %v5193_v49 = vld [vmem:[#allocation158_spill] sm:$0xff]  ;;  %v5196_v52 = vld [vmem:[#allocation159_spill] sm:$0xff] }
  0xc2   :  { %5189 = vst [vmem:[#allocation150_spill] sm:$0xff] %v3400_v55  ;;  %5191 = vst [vmem:[#allocation151_spill] sm:$0xff] %v3404_v56  ;;  %v3412_v10 = vadd.f32 %v5183_v19, %v5193_v49  ;;  %v3420_v0 = vadd.f32 %v5183_v19, %v5196_v52  ;;  %v5198_v55 = vld [vmem:[#allocation71_spill] sm:$0xff]  ;;  %v5199_v56 = vld [vmem:[#allocation72_spill] sm:$0xff]  ;;  %v3432_v49 = vadd.f32 %v5183_v19, %v3040_v57 }
  0xc3   :  { %5195 = vst [vmem:[#allocation35_spill] sm:$0xff] %v3416_v24  ;;  %v3424_v13 = vadd.f32 %v5183_v19, %v5198_v55  ;;  %v3428_v60 = vadd.f32 %v5183_v19, %v5199_v56  ;;  %v5204_v24 = vld [vmem:[#allocation77_spill] sm:$0xff]  ;;  %v3448_v56 = vadd.f32 %v5183_v19, %v3056_v26 }
  0xc4   :  { %5194 = vst [vmem:[#allocation156_spill] sm:$0xff] %v3412_v10  ;;  %5197 = vst [vmem:[#allocation160_spill] sm:$0xff] %v3420_v0  ;;  %v5202_v10 = vld [vmem:[#allocation73_spill] sm:$0xff]  ;;  %v3440_v52 = vadd.f32 %v5183_v19, %v5204_v24  ;;  %v5205_v0 = vld [vmem:[#allocation78_spill] sm:$0xff] }
  0xc5   :  { %5200 = vst [vmem:[#allocation161_spill] sm:$0xff] %v3428_v60  ;;  %5201 = vst [vmem:[#allocation162_spill] sm:$0xff] %v3432_v49  ;;  %v3436_v22 = vadd.f32 %v5183_v19, %v5202_v10  ;;  %v3444_v55 = vadd.f32 %v5183_v19, %v5205_v0  ;;  %v5208_v60 = vld [vmem:[#allocation79_spill] sm:$0xff]  ;;  %v3464_v0 = vadd.f32 %v5183_v19, %v3072_v15 }
  0xc6   :  { %5207 = vst [vmem:[#allocation158_spill] sm:$0xff] %v3448_v56  ;;  %v3452_v57 = vadd.f32 %v5183_v19, %v5208_v60  ;;  %v5210_v49 = vld [vmem:[#allocation83_spill] sm:$0xff]  ;;  %v5216_v56 = vld [vmem:[#allocation89_spill] sm:$0xff] }
  0xc7   :  { %5203 = vst [vmem:[#allocation163_spill] sm:$0xff] %v3436_v22  ;;  %5206 = vst [vmem:[#allocation164_spill] sm:$0xff] %v3444_v55  ;;  %v3456_v10 = vadd.f32 %v5183_v19, %v5210_v49  ;;  %v5211_v22 = vld [vmem:[#allocation84_spill] sm:$0xff]  ;;  %v5214_v55 = vld [vmem:[#allocation85_spill] sm:$0xff]  ;;  %v3472_v60 = vadd.f32 %v5183_v19, %v5216_v56 }
  0xc8   :  { %5209 = vst [vmem:[#allocation159_spill] sm:$0xff] %v3452_v57  ;;  %v3460_v24 = vadd.f32 %v5183_v19, %v5211_v22  ;;  %5213 = vst [vmem:[#allocation72_spill] sm:$0xff] %v3464_v0  ;;  %v3468_v26 = vadd.f32 %v5183_v19, %v5214_v55  ;;  %v5217_v57 = vld [vmem:[#allocation90_spill] sm:$0xff]  ;;  %v3480_v22 = vadd.f32 %v5183_v19, %v3088_v58  ;;  %v5222_v0 = vld [vmem:[#allocation95_spill] sm:$0xff] }
  0xc9   :  { %v3476_v49 = vadd.f32 %v5183_v19, %v5217_v57  ;;  %v3488_v55 = vadd.f32 %v5183_v19, %v5222_v0  ;;  %v3496_v57 = vadd.f32 %v5183_v19, %v3104_v20 }
  0xca   :  { %5212 = vst [vmem:[#allocation71_spill] sm:$0xff] %v3460_v24  ;;  %5215 = vst [vmem:[#allocation73_spill] sm:$0xff] %v3468_v26  ;;  %v5220_v24 = vld [vmem:[#allocation91_spill] sm:$0xff]  ;;  %v5223_v26 = vld [vmem:[#allocation96_spill] sm:$0xff] }
  0xcb   :  { %5218 = vst [vmem:[#allocation77_spill] sm:$0xff] %v3476_v49  ;;  %5219 = vst [vmem:[#allocation78_spill] sm:$0xff] %v3480_v22  ;;  %v3484_v15 = vadd.f32 %v5183_v19, %v5220_v24  ;;  %v3492_v56 = vadd.f32 %v5183_v19, %v5223_v26  ;;  %v5226_v49 = vld [vmem:[#allocation97_spill] sm:$0xff]  ;;  %v3512_v26 = vadd.f32 %v5183_v19, %v3120_v28 }
  0xcc   :  { %5225 = vst [vmem:[#allocation84_spill] sm:$0xff] %v3496_v57  ;;  %v3500_v58 = vadd.f32 %v5183_v19, %v5226_v49  ;;  %v5228_v22 = vld [vmem:[#allocation101_spill] sm:$0xff]  ;;  %v5234_v57 = vld [vmem:[#allocation107_spill] sm:$0xff] }
  0xcd   :  { %5221 = vst [vmem:[#allocation79_spill] sm:$0xff] %v3484_v15  ;;  %5224 = vst [vmem:[#allocation83_spill] sm:$0xff] %v3492_v56  ;;  %v3504_v24 = vadd.f32 %v5183_v19, %v5228_v22  ;;  %v5229_v15 = vld [vmem:[#allocation102_spill] sm:$0xff]  ;;  %v5232_v56 = vld [vmem:[#allocation103_spill] sm:$0xff]  ;;  %v3520_v49 = vadd.f32 %v5183_v19, %v5234_v57 }
  0xce   :  { %5227 = vst [vmem:[#allocation85_spill] sm:$0xff] %v3500_v58  ;;  %v3508_v0 = vadd.f32 %v5183_v19, %v5229_v15  ;;  %5231 = vst [vmem:[#allocation90_spill] sm:$0xff] %v3512_v26  ;;  %v3516_v20 = vadd.f32 %v5183_v19, %v5232_v56  ;;  %v5235_v58 = vld [vmem:[#allocation108_spill] sm:$0xff]  ;;  %v3528_v15 = vadd.f32 %v5183_v19, %v3136_v63  ;;  %v5240_v26 = vld [vmem:[#allocation113_spill] sm:$0xff] }
  0xcf   :  { %v3524_v22 = vadd.f32 %v5183_v19, %v5235_v58  ;;  %v3536_v56 = vadd.f32 %v5183_v19, %v5240_v26  ;;  %v3544_v58 = vadd.f32 %v5183_v19, %v3152_v21 }
  0xd0   :  { %5230 = vst [vmem:[#allocation89_spill] sm:$0xff] %v3508_v0  ;;  %5233 = vst [vmem:[#allocation91_spill] sm:$0xff] %v3516_v20  ;;  %v5238_v0 = vld [vmem:[#allocation109_spill] sm:$0xff]  ;;  %v5241_v20 = vld [vmem:[#allocation114_spill] sm:$0xff] }
  0xd1   :  { %5236 = vst [vmem:[#allocation95_spill] sm:$0xff] %v3524_v22  ;;  %5237 = vst [vmem:[#allocation96_spill] sm:$0xff] %v3528_v15  ;;  %v3532_v28 = vadd.f32 %v5183_v19, %v5238_v0  ;;  %v3540_v57 = vadd.f32 %v5183_v19, %v5241_v20  ;;  %v5244_v22 = vld [vmem:[#allocation115_spill] sm:$0xff]  ;;  %v3560_v20 = vadd.f32 %v5183_v19, %v3168_v29 }
  0xd2   :  { %5243 = vst [vmem:[#allocation102_spill] sm:$0xff] %v3544_v58  ;;  %v3548_v63 = vadd.f32 %v5183_v19, %v5244_v22  ;;  %v5246_v15 = vld [vmem:[#allocation119_spill] sm:$0xff]  ;;  %v5252_v58 = vld [vmem:[#allocation125_spill] sm:$0xff] }
  0xd3   :  { %5239 = vst [vmem:[#allocation97_spill] sm:$0xff] %v3532_v28  ;;  %5242 = vst [vmem:[#allocation101_spill] sm:$0xff] %v3540_v57  ;;  %v3552_v0 = vadd.f32 %v5183_v19, %v5246_v15  ;;  %v5247_v28 = vld [vmem:[#allocation120_spill] sm:$0xff]  ;;  %v5250_v57 = vld [vmem:[#allocation121_spill] sm:$0xff]  ;;  %v3568_v22 = vadd.f32 %v5183_v19, %v5252_v58 }
  0xd4   :  { %5245 = vst [vmem:[#allocation103_spill] sm:$0xff] %v3548_v63  ;;  %v3556_v26 = vadd.f32 %v5183_v19, %v5247_v28  ;;  %5249 = vst [vmem:[#allocation108_spill] sm:$0xff] %v3560_v20  ;;  %v3564_v21 = vadd.f32 %v5183_v19, %v5250_v57  ;;  %v5253_v63 = vld [vmem:[#allocation126_spill] sm:$0xff]  ;;  %v3576_v28 = vadd.f32 %v5183_v19, %v3184_v36  ;;  %v5255_v20 = vld [vmem:[#allocation131_spill] sm:$0xff] }
  0xd5   :  { %v3572_v15 = vadd.f32 %v5183_v19, %v5253_v63  ;;  %v3584_v57 = vadd.f32 %v5183_v19, %v5255_v20  ;;  %v3592_v63 = vadd.f32 %v5183_v19, %v3200_v1  ;;  %v3596_v36 = vadd.f32 %v5183_v19, %v3204_v7 }
  0xd6   :  { %5248 = vst [vmem:[#allocation107_spill] sm:$0xff] %v3556_v26  ;;  %5251 = vst [vmem:[#allocation109_spill] sm:$0xff] %v3564_v21  ;;  %v5254_v26 = vld [vmem:[#allocation127_spill] sm:$0xff]  ;;  %v5256_v21 = vld [vmem:[#allocation132_spill] sm:$0xff]  ;;  %v3604_v20 = vadd.f32 %v5183_v19, %v3212_v51  ;;  %v3612_v1 = vadd.f32 %v5183_v19, %v3220_v11  ;;  %v3616_v7 = vadd.f32 %v5183_v19, %v3224_v35 }
  0xd7   :  { %v3580_v29 = vadd.f32 %v5183_v19, %v5254_v26  ;;  %v3588_v58 = vadd.f32 %v5183_v19, %v5256_v21  ;;  %5257 = vst [vmem:[#allocation113_spill] sm:$0xff] %v3596_v36  ;;  %v3600_v26 = vadd.f32 %v5183_v19, %v3208_v53  ;;  %v3608_v21 = vadd.f32 %v5183_v19, %v3216_v30  ;;  %v5261_v36 = vld [vmem:[#allocation133_spill] sm:$0xff] }
  0xd8   :  { %5259 = vst [vmem:[#allocation115_spill] sm:$0xff] %v3612_v1  ;;  %5260 = vst [vmem:[#allocation119_spill] sm:$0xff] %v3616_v7  ;;  %v3620_v53 = vadd.f32 %v5183_v19, %v5261_v36  ;;  %v3624_v51 = vadd.f32 %v5183_v19, %v3232_v37  ;;  %v3628_v30 = vadd.f32 %v5183_v19, %v3236_v38  ;;  %v5265_v1 = vld [vmem:[#allocation138_spill] sm:$0xff]  ;;  %v5266_v7 = vld [vmem:[#allocation139_spill] sm:$0xff] }
  0xd9   :  { %5258 = vst [vmem:[#allocation114_spill] sm:$0xff] %v3608_v21  ;;  %v5264_v21 = vld [vmem:[#allocation137_spill] sm:$0xff]  ;;  %v3636_v35 = vadd.f32 %v5183_v19, %v5265_v1  ;;  %v3640_v36 = vadd.f32 %v5183_v19, %v5266_v7  ;;  %v3656_v1 = vadd.f32 %v5183_v19, %v3264_v2  ;;  %v3660_v7 = vadd.f32 %v5183_v19, %v3268_v17 }
  0xda   :  { %5262 = vst [vmem:[#allocation120_spill] sm:$0xff] %v3620_v53  ;;  %5263 = vst [vmem:[#allocation121_spill] sm:$0xff] %v3624_v51  ;;  %v3632_v11 = vadd.f32 %v5183_v19, %v5264_v21  ;;  %v5267_v53 = vld [vmem:[#allocation143_spill] sm:$0xff]  ;;  %v5268_v51 = vld [vmem:[#allocation144_spill] sm:$0xff]  ;;  %v3652_v21 = vadd.f32 %v5183_v19, %v3260_v14  ;;  %v3672_v14 = vadd.f32 %v5183_v19, %v3280_v54 }
  0xdb   :  { %v3644_v37 = vadd.f32 %v5183_v19, %v5267_v53  ;;  %v3648_v38 = vadd.f32 %v5183_v19, %v5268_v51  ;;  %5269 = vst [vmem:[#allocation125_spill] sm:$0xff] %v3656_v1  ;;  %5270 = vst [vmem:[#allocation126_spill] sm:$0xff] %v3660_v7  ;;  %v3664_v53 = vadd.f32 %v5183_v19, %v3272_v59  ;;  %v5274_v1 = vld [vmem:[#allocation15_spill] sm:$0xff]  ;;  %v5275_v7 = vld [vmem:[#allocation16_spill] sm:$0xff] }
  0xdc   :  { %v3668_v51 = vadd.f32 %v5183_v19, %v3276_v9  ;;  %5273 = vst [vmem:[#allocation132_spill] sm:$0xff] %v3672_v14  ;;  %v3676_v2 = vadd.f32 %v5183_v19, %v3284_v43  ;;  %v3680_v17 = vmul.f32 %v3288_v25, %v5274_v1  ;;  %v3684_v59 = vmul.f32 %v3292_v6, %v5275_v7  ;;  %v5278_v14 = vld [vmem:[#allocation19_spill] sm:$0xff]  ;;  %v5279_v43 = vld [vmem:[#allocation20_spill] sm:$0xff]  ;;  %v5280_v1 = vld [vmem:[#allocation21_spill] sm:$0xff] }
  0xdd   :  { %5271 = vst [vmem:[#allocation127_spill] sm:$0xff] %v3664_v53  ;;  %v5276_v53 = vld [vmem:[#allocation17_spill] sm:$0xff]  ;;  %v3696_v19 = vmul.f32 %v3304_v62, %v5278_v14  ;;  %v3700_v25 = vmul.f32 %v3308_v12, %v5279_v43  ;;  %v3704_v6 = vmul.f32 %v3312_v27, %v5280_v1  ;;  %v5281_v7 = vld [vmem:[#allocation22_spill] sm:$0xff]  ;;  %v5286_v1 = vld [vmem:[#allocation27_spill] sm:$0xff] }
  0xde   :  { %5272 = vst [vmem:[#allocation131_spill] sm:$0xff] %v3668_v51  ;;  %v3688_v9 = vmul.f32 %v3296_v61, %v5276_v53  ;;  %v5277_v51 = vld [vmem:[#allocation18_spill] sm:$0xff]  ;;  %v3708_v61 = vmul.f32 %v3316_v46, %v5281_v7  ;;  %v5282_v53 = vld [vmem:[#allocation23_spill] sm:$0xff]  ;;  %v5284_v14 = vld [vmem:[#allocation25_spill] sm:$0xff]  ;;  %v3728_v46 = vmul.f32 %v3336_v8, %v5286_v1 }
  0xdf   :  { %v3692_v54 = vmul.f32 %v3300_v4, %v5277_v51  ;;  %v3712_v4 = vmul.f32 %v3320_v45, %v5282_v53  ;;  %v5283_v51 = vld [vmem:[#allocation24_spill] sm:$0xff]  ;;  %v3720_v12 = vmul.f32 %v3328_v44, %v5284_v14  ;;  %v5285_v43 = vld [vmem:[#allocation26_spill] sm:$0xff]  ;;  %v5288_v53 = vld [vmem:[#allocation29_spill] sm:$0xff] }
  0xe0   :  { %v3716_v62 = vmul.f32 %v3324_v3, %v5283_v51  ;;  %v3724_v27 = vmul.f32 %v3332_v5, %v5285_v43  ;;  %v5287_v7 = vld [vmem:[#allocation28_spill] sm:$0xff]  ;;  %v3736_v3 = vmul.f32 %v3344_v31, %v5288_v53  ;;  %v5289_v51 = vld [vmem:[#allocation30_spill] sm:$0xff]  ;;  %v5290_v14 = vld [vmem:[#allocation31_spill] sm:$0xff] }
  0xe1   :  { %v3732_v45 = vmul.f32 %v3340_v18, %v5287_v7  ;;  %v3740_v44 = vmul.f32 %v3348_v32, %v5289_v51  ;;  %v3744_v5 = vmul.f32 %v3352_v23, %v5290_v14  ;;  %v5291_v43 = vld [vmem:[#allocation32_spill] sm:$0xff]  ;;  %v5292_v1 = vld [vmem:[#allocation33_spill] sm:$0xff]  ;;  %v5293_v7 = vld [vmem:[#allocation34_spill] sm:$0xff] }
  0xe2   :  { %v3748_v8 = vmul.f32 %v3356_v33, %v5291_v43  ;;  %v3752_v18 = vmul.f32 %v3360_v34, %v5292_v1  ;;  %v3756_v31 = vmul.f32 %v3364_v39, %v5293_v7  ;;  %v5295_v53 = vld [vmem:[#allocation37_spill] sm:$0xff]  ;;  %v5296_v51 = vld [vmem:[#allocation38_spill] sm:$0xff]  ;;  %v5298_v14 = vld [vmem:[#allocation39_spill] sm:$0xff] }
  0xe3   :  { %v3760_v32 = vmul.f32 %v3368_v40, %v5295_v53  ;;  %v3764_v23 = vmul.f32 %v3372_v41, %v5296_v51  ;;  %v3768_v33 = vmul.f32 %v3376_v42, %v5298_v14  ;;  %v5300_v43 = vld [vmem:[#allocation40_spill] sm:$0xff]  ;;  %v5302_v1 = vld [vmem:[#allocation41_spill] sm:$0xff]  ;;  %v5303_v7 = vld [vmem:[#allocation42_spill] sm:$0xff] }
  0xe4   :  { %5294 = vst [vmem:[#allocation133_spill] sm:$0xff] %v3756_v31  ;;  %v3772_v34 = vmul.f32 %v3380_v47, %v5300_v43  ;;  %v3776_v39 = vmul.f32 %v3384_v48, %v5302_v1  ;;  %v5304_v31 = vld [vmem:[#allocation145_spill] sm:$0xff]  ;;  %v5306_v53 = vld [vmem:[#allocation43_spill] sm:$0xff]  ;;  %v5308_v51 = vld [vmem:[#allocation44_spill] sm:$0xff] }
  0xe5   :  { %5297 = vst [vmem:[#allocation137_spill] sm:$0xff] %v3764_v23  ;;  %5299 = vst [vmem:[#allocation138_spill] sm:$0xff] %v3768_v33  ;;  %v3780_v40 = vmul.f32 %v5304_v31, %v5303_v7  ;;  %v3784_v41 = vmul.f32 %v3392_v50, %v5306_v53  ;;  %v5309_v23 = vld [vmem:[#allocation149_spill] sm:$0xff]  ;;  %v5312_v33 = vld [vmem:[#allocation150_spill] sm:$0xff] }
  0xe6   :  { %5301 = vst [vmem:[#allocation139_spill] sm:$0xff] %v3772_v34  ;;  %v3788_v42 = vmul.f32 %v5309_v23, %v5308_v51  ;;  %v5311_v14 = vld [vmem:[#allocation45_spill] sm:$0xff]  ;;  %v5313_v43 = vld [vmem:[#allocation46_spill] sm:$0xff]  ;;  %v5314_v34 = vld [vmem:[#allocation151_spill] sm:$0xff] }
  0xe7   :  { %5305 = vst [vmem:[#allocation143_spill] sm:$0xff] %v3780_v40  ;;  %5307 = vst [vmem:[#allocation144_spill] sm:$0xff] %v3784_v41  ;;  %v3792_v47 = vmul.f32 %v5312_v33, %v5311_v14  ;;  %v3796_v48 = vmul.f32 %v5314_v34, %v5313_v43  ;;  %v5316_v1 = vld [vmem:[#allocation47_spill] sm:$0xff]  ;;  %v5318_v7 = vld [vmem:[#allocation48_spill] sm:$0xff] }
  0xe8   :  { %5310 = vst [vmem:[#allocation15_spill] sm:$0xff] %v3788_v42  ;;  %v3800_v31 = vmul.f32 %v3408_v16, %v5316_v1  ;;  %v5319_v40 = vld [vmem:[#allocation156_spill] sm:$0xff]  ;;  %v5321_v53 = vld [vmem:[#allocation49_spill] sm:$0xff]  ;;  %v5322_v41 = vld [vmem:[#allocation35_spill] sm:$0xff] }
  0xe9   :  { %5315 = vst [vmem:[#allocation16_spill] sm:$0xff] %v3796_v48  ;;  %v3804_v50 = vmul.f32 %v5319_v40, %v5318_v7  ;;  %v3808_v23 = vmul.f32 %v5322_v41, %v5321_v53  ;;  %v5323_v51 = vld [vmem:[#allocation50_spill] sm:$0xff]  ;;  %v5324_v42 = vld [vmem:[#allocation160_spill] sm:$0xff]  ;;  %v5326_v14 = vld [vmem:[#allocation51_spill] sm:$0xff] }
  0xea   :  { %5317 = vst [vmem:[#allocation17_spill] sm:$0xff] %v3800_v31  ;;  %v3812_v33 = vmul.f32 %v5324_v42, %v5323_v51  ;;  %v3816_v34 = vmul.f32 %v3424_v13, %v5326_v14  ;;  %v5328_v43 = vld [vmem:[#allocation52_spill] sm:$0xff]  ;;  %v5329_v48 = vld [vmem:[#allocation161_spill] sm:$0xff]  ;;  %v5332_v31 = vld [vmem:[#allocation162_spill] sm:$0xff] }
  0xeb   :  { %5320 = vst [vmem:[#allocation18_spill] sm:$0xff] %v3804_v50  ;;  %v3820_v16 = vmul.f32 %v5329_v48, %v5328_v43  ;;  %v5331_v1 = vld [vmem:[#allocation53_spill] sm:$0xff]  ;;  %v5333_v7 = vld [vmem:[#allocation54_spill] sm:$0xff]  ;;  %v5334_v50 = vld [vmem:[#allocation163_spill] sm:$0xff] }
  0xec   :  { %5325 = vst [vmem:[#allocation19_spill] sm:$0xff] %v3812_v33  ;;  %5327 = vst [vmem:[#allocation20_spill] sm:$0xff] %v3816_v34  ;;  %v3824_v40 = vmul.f32 %v5332_v31, %v5331_v1  ;;  %v3828_v41 = vmul.f32 %v5334_v50, %v5333_v7  ;;  %v5336_v53 = vld [vmem:[#allocation55_spill] sm:$0xff]  ;;  %v5338_v51 = vld [vmem:[#allocation56_spill] sm:$0xff] }
  0xed   :  { %5330 = vst [vmem:[#allocation21_spill] sm:$0xff] %v3820_v16  ;;  %v3832_v42 = vmul.f32 %v3440_v52, %v5336_v53  ;;  %v5339_v33 = vld [vmem:[#allocation164_spill] sm:$0xff]  ;;  %v5341_v14 = vld [vmem:[#allocation57_spill] sm:$0xff]  ;;  %v5342_v34 = vld [vmem:[#allocation158_spill] sm:$0xff] }
  0xee   :  { %5335 = vst [vmem:[#allocation22_spill] sm:$0xff] %v3828_v41  ;;  %v3836_v13 = vmul.f32 %v5339_v33, %v5338_v51  ;;  %v3840_v48 = vmul.f32 %v5342_v34, %v5341_v14  ;;  %v5343_v43 = vld [vmem:[#allocation58_spill] sm:$0xff]  ;;  %v5344_v16 = vld [vmem:[#allocation159_spill] sm:$0xff]  ;;  %v5348_v7 = vld [vmem:[#allocation60_spill] sm:$0xff] }
  0xef   :  { %5337 = vst [vmem:[#allocation23_spill] sm:$0xff] %v3832_v42  ;;  %v3844_v31 = vmul.f32 %v5344_v16, %v5343_v43  ;;  %v5346_v1 = vld [vmem:[#allocation59_spill] sm:$0xff]  ;;  %v5351_v53 = vld [vmem:[#allocation61_spill] sm:$0xff]  ;;  %v5352_v42 = vld [vmem:[#allocation72_spill] sm:$0xff] }
  0xf0   :  { %5340 = vst [vmem:[#allocation24_spill] sm:$0xff] %v3836_v13  ;;  %v3848_v50 = vmul.f32 %v3456_v10, %v5346_v1  ;;  %v5349_v41 = vld [vmem:[#allocation71_spill] sm:$0xff]  ;;  %v3856_v33 = vmul.f32 %v5352_v42, %v5351_v53  ;;  %v5353_v51 = vld [vmem:[#allocation62_spill] sm:$0xff]  ;;  %v5354_v13 = vld [vmem:[#allocation73_spill] sm:$0xff] }
  0xf1   :  { %5345 = vst [vmem:[#allocation25_spill] sm:$0xff] %v3844_v31  ;;  %v3852_v52 = vmul.f32 %v5349_v41, %v5348_v7  ;;  %v3860_v34 = vmul.f32 %v5354_v13, %v5353_v51  ;;  %v5356_v14 = vld [vmem:[#allocation63_spill] sm:$0xff]  ;;  %v5358_v43 = vld [vmem:[#allocation64_spill] sm:$0xff]  ;;  %v5359_v31 = vld [vmem:[#allocation77_spill] sm:$0xff] }
  0xf2   :  { %5347 = vst [vmem:[#allocation26_spill] sm:$0xff] %v3848_v50  ;;  %v3864_v16 = vmul.f32 %v3472_v60, %v5356_v14  ;;  %v3868_v10 = vmul.f32 %v5359_v31, %v5358_v43  ;;  %v5361_v1 = vld [vmem:[#allocation65_spill] sm:$0xff]  ;;  %v5362_v50 = vld [vmem:[#allocation78_spill] sm:$0xff]  ;;  %v5366_v53 = vld [vmem:[#allocation67_spill] sm:$0xff] }
  0xf3   :  { %5350 = vst [vmem:[#allocation27_spill] sm:$0xff] %v3852_v52  ;;  %5355 = vst [vmem:[#allocation28_spill] sm:$0xff] %v3860_v34  ;;  %v3872_v41 = vmul.f32 %v5362_v50, %v5361_v1  ;;  %v5363_v7 = vld [vmem:[#allocation66_spill] sm:$0xff]  ;;  %v5364_v52 = vld [vmem:[#allocation79_spill] sm:$0xff]  ;;  %v3880_v13 = vmul.f32 %v3488_v55, %v5366_v53 }
  0xf4   :  { %5357 = vst [vmem:[#allocation29_spill] sm:$0xff] %v3864_v16  ;;  %5360 = vst [vmem:[#allocation30_spill] sm:$0xff] %v3868_v10  ;;  %v3876_v42 = vmul.f32 %v5364_v52, %v5363_v7  ;;  %v5368_v51 = vld [vmem:[#allocation68_spill] sm:$0xff]  ;;  %v5369_v34 = vld [vmem:[#allocation83_spill] sm:$0xff] }
  0xf5   :  { %5367 = vst [vmem:[#allocation32_spill] sm:$0xff] %v3880_v13  ;;  %v3884_v60 = vmul.f32 %v5369_v34, %v5368_v51  ;;  %v5371_v14 = vld [vmem:[#allocation69_spill] sm:$0xff]  ;;  %v5372_v16 = vld [vmem:[#allocation84_spill] sm:$0xff]  ;;  %v5373_v43 = vld [vmem:[#allocation70_spill] sm:$0xff] }
  0xf6   :  { %5365 = vst [vmem:[#allocation31_spill] sm:$0xff] %v3876_v42  ;;  %v3888_v31 = vmul.f32 %v5372_v16, %v5371_v14  ;;  %v5374_v10 = vld [vmem:[#allocation85_spill] sm:$0xff]  ;;  %v5376_v1 = vld [vmem:[#allocation74_spill] sm:$0xff]  ;;  %v5378_v7 = vld [vmem:[#allocation75_spill] sm:$0xff] }
  0xf7   :  { %5370 = vst [vmem:[#allocation33_spill] sm:$0xff] %v3884_v60  ;;  %v3892_v50 = vmul.f32 %v5374_v10, %v5373_v43  ;;  %v3896_v52 = vmul.f32 %v3504_v24, %v5376_v1  ;;  %v5379_v42 = vld [vmem:[#allocation89_spill] sm:$0xff]  ;;  %v5381_v53 = vld [vmem:[#allocation76_spill] sm:$0xff]  ;;  %v5382_v13 = vld [vmem:[#allocation90_spill] sm:$0xff] }
  0xf8   :  { %v3900_v55 = vmul.f32 %v5379_v42, %v5378_v7  ;;  %v3904_v34 = vmul.f32 %v5382_v13, %v5381_v53  ;;  %v5383_v51 = vld [vmem:[#allocation80_spill] sm:$0xff]  ;;  %v5384_v60 = vld [vmem:[#allocation91_spill] sm:$0xff]  ;;  %v5386_v14 = vld [vmem:[#allocation81_spill] sm:$0xff] }
  0xf9   :  { %5375 = vst [vmem:[#allocation34_spill] sm:$0xff] %v3892_v50  ;;  %5377 = vst [vmem:[#allocation37_spill] sm:$0xff] %v3896_v52  ;;  %v3908_v16 = vmul.f32 %v5384_v60, %v5383_v51  ;;  %v3912_v10 = vmul.f32 %v3520_v49, %v5386_v14  ;;  %v5388_v43 = vld [vmem:[#allocation82_spill] sm:$0xff]  ;;  %v5389_v50 = vld [vmem:[#allocation95_spill] sm:$0xff] }
  0xfa   :  { %5380 = vst [vmem:[#allocation38_spill] sm:$0xff] %v3900_v55  ;;  %v3916_v24 = vmul.f32 %v5389_v50, %v5388_v43  ;;  %v5391_v1 = vld [vmem:[#allocation86_spill] sm:$0xff]  ;;  %v5392_v52 = vld [vmem:[#allocation96_spill] sm:$0xff]  ;;  %v5393_v7 = vld [vmem:[#allocation87_spill] sm:$0xff] }
  0xfb   :  { %5385 = vst [vmem:[#allocation39_spill] sm:$0xff] %v3908_v16  ;;  %5387 = vst [vmem:[#allocation40_spill] sm:$0xff] %v3912_v10  ;;  %v3920_v42 = vmul.f32 %v5392_v52, %v5391_v1  ;;  %v5394_v55 = vld [vmem:[#allocation97_spill] sm:$0xff]  ;;  %v5396_v53 = vld [vmem:[#allocation88_spill] sm:$0xff] }
  0xfc   :  { %5390 = vst [vmem:[#allocation41_spill] sm:$0xff] %v3916_v24  ;;  %v3924_v13 = vmul.f32 %v5394_v55, %v5393_v7  ;;  %v3928_v60 = vmul.f32 %v3536_v56, %v5396_v53  ;;  %v5398_v51 = vld [vmem:[#allocation92_spill] sm:$0xff]  ;;  %v5399_v16 = vld [vmem:[#allocation101_spill] sm:$0xff]  ;;  %v5402_v10 = vld [vmem:[#allocation102_spill] sm:$0xff] }
  0xfd   :  { %v3932_v49 = vmul.f32 %v5399_v16, %v5398_v51  ;;  %v5401_v14 = vld [vmem:[#allocation93_spill] sm:$0xff]  ;;  %v5403_v43 = vld [vmem:[#allocation94_spill] sm:$0xff]  ;;  %v5404_v24 = vld [vmem:[#allocation103_spill] sm:$0xff] }
  0xfe   :  { %5395 = vst [vmem:[#allocation42_spill] sm:$0xff] %v3924_v13  ;;  %5397 = vst [vmem:[#allocation145_spill] sm:$0xff] %v3928_v60  ;;  %v3936_v50 = vmul.f32 %v5402_v10, %v5401_v14  ;;  %v3940_v52 = vmul.f32 %v5404_v24, %v5403_v43  ;;  %v5405_v1 = vld [vmem:[#allocation98_spill] sm:$0xff]  ;;  %v5406_v7 = vld [vmem:[#allocation99_spill] sm:$0xff] }
  0xff   :  { %5400 = vst [vmem:[#allocation43_spill] sm:$0xff] %v3932_v49  ;;  %v3944_v55 = vmul.f32 %v3552_v0, %v5405_v1  ;;  %v5407_v13 = vld [vmem:[#allocation107_spill] sm:$0xff]  ;;  %v5408_v53 = vld [vmem:[#allocation100_spill] sm:$0xff]  ;;  %v5411_v49 = vld [vmem:[#allocation109_spill] sm:$0xff] }
 0x100   :  { %v3948_v56 = vmul.f32 %v5407_v13, %v5406_v7  ;;  %v5409_v60 = vld [vmem:[#allocation108_spill] sm:$0xff]  ;;  %v5412_v14 = vld [vmem:[#allocation105_spill] sm:$0xff]  ;;  %v5413_v43 = vld [vmem:[#allocation106_spill] sm:$0xff] }
 0x101   :  { %v3952_v16 = vmul.f32 %v5409_v60, %v5408_v53  ;;  %v5410_v51 = vld [vmem:[#allocation104_spill] sm:$0xff]  ;;  %v3960_v24 = vmul.f32 %v3568_v22, %v5412_v14  ;;  %v3964_v0 = vmul.f32 %v3572_v15, %v5413_v43  ;;  %v5415_v1 = vld [vmem:[#allocation110_spill] sm:$0xff]  ;;  %v5416_v7 = vld [vmem:[#allocation111_spill] sm:$0xff] }
 0x102   :  { %v3956_v10 = vmul.f32 %v5411_v49, %v5410_v51  ;;  %v3968_v13 = vmul.f32 %v3576_v28, %v5415_v1  ;;  %v3972_v60 = vmul.f32 %v3580_v29, %v5416_v7  ;;  %v5417_v53 = vld [vmem:[#allocation112_spill] sm:$0xff]  ;;  %v5421_v14 = vld [vmem:[#allocation117_spill] sm:$0xff]  ;;  %v5423_v43 = vld [vmem:[#allocation118_spill] sm:$0xff] }
 0x103   :  { %5414 = vst [vmem:[#allocation44_spill] sm:$0xff] %v3964_v0  ;;  %v3976_v49 = vmul.f32 %v3584_v57, %v5417_v53  ;;  %v5419_v51 = vld [vmem:[#allocation116_spill] sm:$0xff]  ;;  %v3984_v15 = vmul.f32 %v3592_v63, %v5421_v14  ;;  %v5424_v0 = vld [vmem:[#allocation113_spill] sm:$0xff]  ;;  %v5426_v1 = vld [vmem:[#allocation122_spill] sm:$0xff] }
 0x104   :  { %v3980_v22 = vmul.f32 %v3588_v58, %v5419_v51  ;;  %v3988_v28 = vmul.f32 %v5424_v0, %v5423_v43  ;;  %v3992_v29 = vmul.f32 %v3600_v26, %v5426_v1  ;;  %v5428_v7 = vld [vmem:[#allocation123_spill] sm:$0xff]  ;;  %v5429_v53 = vld [vmem:[#allocation124_spill] sm:$0xff]  ;;  %v5433_v14 = vld [vmem:[#allocation129_spill] sm:$0xff] }
 0x105   :  { %5418 = vst [vmem:[#allocation149_spill] sm:$0xff] %v3976_v49  ;;  %5422 = vst [vmem:[#allocation150_spill] sm:$0xff] %v3984_v15  ;;  %v3996_v57 = vmul.f32 %v3604_v20, %v5428_v7  ;;  %v5430_v49 = vld [vmem:[#allocation114_spill] sm:$0xff]  ;;  %v5431_v51 = vld [vmem:[#allocation128_spill] sm:$0xff] }
 0x106   :  { %5420 = vst [vmem:[#allocation45_spill] sm:$0xff] %v3980_v22  ;;  %5425 = vst [vmem:[#allocation46_spill] sm:$0xff] %v3988_v28  ;;  %v4000_v58 = vmul.f32 %v5430_v49, %v5429_v53  ;;  %v5432_v22 = vld [vmem:[#allocation115_spill] sm:$0xff]  ;;  %v5435_v43 = vld [vmem:[#allocation130_spill] sm:$0xff] }
 0x107   :  { %5427 = vst [vmem:[#allocation151_spill] sm:$0xff] %v3992_v29  ;;  %v4004_v63 = vmul.f32 %v5432_v22, %v5431_v51  ;;  %v5434_v15 = vld [vmem:[#allocation119_spill] sm:$0xff]  ;;  %v5436_v28 = vld [vmem:[#allocation120_spill] sm:$0xff]  ;;  %v5437_v1 = vld [vmem:[#allocation134_spill] sm:$0xff] }
 0x108   :  { %v4008_v0 = vmul.f32 %v5434_v15, %v5433_v14  ;;  %v4012_v26 = vmul.f32 %v5436_v28, %v5435_v43  ;;  %v5438_v29 = vld [vmem:[#allocation121_spill] sm:$0xff]  ;;  %v5439_v7 = vld [vmem:[#allocation135_spill] sm:$0xff]  ;;  %v5440_v53 = vld [vmem:[#allocation136_spill] sm:$0xff] }
 0x109   :  { %v4016_v20 = vmul.f32 %v5438_v29, %v5437_v1  ;;  %v4020_v49 = vmul.f32 %v3628_v30, %v5439_v7  ;;  %v4024_v22 = vmul.f32 %v3632_v11, %v5440_v53  ;;  %v5442_v51 = vld [vmem:[#allocation140_spill] sm:$0xff]  ;;  %v5444_v14 = vld [vmem:[#allocation141_spill] sm:$0xff]  ;;  %v5446_v43 = vld [vmem:[#allocation142_spill] sm:$0xff] }
 0x10a   :  { %v4028_v15 = vmul.f32 %v3636_v35, %v5442_v51  ;;  %v4032_v28 = vmul.f32 %v3640_v36, %v5444_v14  ;;  %v4036_v29 = vmul.f32 %v3644_v37, %v5446_v43  ;;  %v5448_v1 = vld [vmem:[#allocation146_spill] sm:$0xff]  ;;  %v5450_v7 = vld [vmem:[#allocation147_spill] sm:$0xff]  ;;  %v5451_v53 = vld [vmem:[#allocation148_spill] sm:$0xff] }
 0x10b   :  { %5441 = vst [vmem:[#allocation47_spill] sm:$0xff] %v4024_v22  ;;  %v4040_v30 = vmul.f32 %v3648_v38, %v5448_v1  ;;  %v4044_v11 = vmul.f32 %v3652_v21, %v5450_v7  ;;  %v5452_v22 = vld [vmem:[#allocation125_spill] sm:$0xff]  ;;  %v5453_v51 = vld [vmem:[#allocation152_spill] sm:$0xff]  ;;  %v5457_v43 = vld [vmem:[#allocation154_spill] sm:$0xff] }
 0x10c   :  { %5443 = vst [vmem:[#allocation48_spill] sm:$0xff] %v4028_v15  ;;  %5445 = vst [vmem:[#allocation156_spill] sm:$0xff] %v4032_v28  ;;  %v4048_v35 = vmul.f32 %v5452_v22, %v5451_v53  ;;  %v5454_v15 = vld [vmem:[#allocation126_spill] sm:$0xff]  ;;  %v5455_v14 = vld [vmem:[#allocation153_spill] sm:$0xff] }
 0x10d   :  { %5447 = vst [vmem:[#allocation49_spill] sm:$0xff] %v4036_v29  ;;  %5449 = vst [vmem:[#allocation35_spill] sm:$0xff] %v4040_v30  ;;  %v4052_v36 = vmul.f32 %v5454_v15, %v5453_v51  ;;  %v5456_v28 = vld [vmem:[#allocation127_spill] sm:$0xff]  ;;  %v5460_v30 = vld [vmem:[#allocation132_spill] sm:$0xff] }
 0x10e   :  { %v4056_v37 = vmul.f32 %v5456_v28, %v5455_v14  ;;  %v5458_v29 = vld [vmem:[#allocation131_spill] sm:$0xff]  ;;  %v5461_v7 = vld [vmem:[#allocation157_spill] sm:$0xff]  ;;  %v5462_v53 = vld [vmem:[#allocation36_spill] sm:$0xff] }
 0x10f   :  { %v4060_v38 = vmul.f32 %v5458_v29, %v5457_v43  ;;  %v5459_v1 = vld [vmem:[#allocation155_spill] sm:$0xff]  ;;  %v4068_v22 = vmul.f32 %v3676_v2, %v5461_v7  ;;  %v1616_v15 = vadd.f32 %v5462_v53, %v3680_v17  ;;  %v1617_v51 = vadd.f32 %v5462_v53, %v3684_v59 }
 0x110   :  { %v4064_v21 = vmul.f32 %v5460_v30, %v5459_v1  ;;  %v1618_v28 = vadd.f32 %v5462_v53, %v3688_v9  ;;  %v1619_v29 = vadd.f32 %v5462_v53, %v3692_v54  ;;  %v1620_v30 = vadd.f32 %v5462_v53, %v3696_v19  ;;  %v5467_v7 = vld [vmem:[#allocation143_spill] sm:$0xff] }
 0x111   :  { %v1621_v14 = vadd.f32 %v5462_v53, %v3700_v25  ;;  %v1622_v2 = vadd.f32 %v5462_v53, %v3704_v6  ;;  %v1623_v17 = vadd.f32 %v5462_v53, %v3708_v61  ;;  %v1624_v59 = vadd.f32 %v5462_v53, %v3712_v4  ;;  %1714 = vst [vmem:[%s4564_s4] sm:$0xff] %v1616_v15 }
 0x112   :  { %v1625_v9 = vadd.f32 %v5462_v53, %v3716_v62  ;;  %v1626_v54 = vadd.f32 %v5462_v53, %v3720_v12  ;;  %v1627_v19 = vadd.f32 %v5462_v53, %v3724_v27  ;;  %v1628_v25 = vadd.f32 %v5462_v53, %v3728_v46  ;;  %1715 = vst [vmem:[%s4564_s4 + $0x8] sm:$0xff] %v1617_v51  ;;  %v5463_v46 = vld [vmem:[#allocation133_spill] sm:$0xff] }
 0x113   :  { %1716 = vst [vmem:[%s4564_s4 + $0x10] sm:$0xff] %v1618_v28  ;;  %1717 = vst [vmem:[%s4564_s4 + $0x18] sm:$0xff] %v1619_v29  ;;  %v1629_v6 = vadd.f32 %v5462_v53, %v3732_v45  ;;  %v1630_v61 = vadd.f32 %v5462_v53, %v3736_v3  ;;  %v1631_v4 = vadd.f32 %v5462_v53, %v3740_v44  ;;  %v5464_v44 = vld [vmem:[#allocation137_spill] sm:$0xff]  ;;  %v5469_v28 = vld [vmem:[#allocation15_spill] sm:$0xff] }
 0x114   :  { %1718 = vst [vmem:[%s4564_s4 + $0x20] sm:$0xff] %v1620_v30  ;;  %v1632_v62 = vadd.f32 %v5462_v53, %v3744_v5  ;;  %1719 = vst [vmem:[%s4564_s4 + $0x28] sm:$0xff] %v1621_v14  ;;  %v1633_v12 = vadd.f32 %v5462_v53, %v3748_v8  ;;  %v1634_v27 = vadd.f32 %v5462_v53, %v3752_v18  ;;  %v5465_v8 = vld [vmem:[#allocation138_spill] sm:$0xff]  ;;  %v5470_v14 = vld [vmem:[#allocation16_spill] sm:$0xff] }
 0x115   :  { %1720 = vst [vmem:[%s4564_s4 + $0x30] sm:$0xff] %v1622_v2  ;;  %1721 = vst [vmem:[%s4564_s4 + $0x38] sm:$0xff] %v1623_v17  ;;  %v1635_v45 = vadd.f32 %v5462_v53, %v5463_v46  ;;  %v1636_v3 = vadd.f32 %v5462_v53, %v3760_v32  ;;  %v1637_v5 = vadd.f32 %v5462_v53, %v5464_v44  ;;  %v5466_v32 = vld [vmem:[#allocation139_spill] sm:$0xff] }
 0x116   :  { %1722 = vst [vmem:[%s4564_s4 + $0x40] sm:$0xff] %v1624_v59  ;;  %1723 = vst [vmem:[%s4564_s4 + $0x48] sm:$0xff] %v1625_v9  ;;  %v1638_v18 = vadd.f32 %v5462_v53, %v5465_v8  ;;  %v1639_v43 = vadd.f32 %v5462_v53, %v5466_v32  ;;  %v1640_v1 = vadd.f32 %v5462_v53, %v3776_v39  ;;  %v5468_v39 = vld [vmem:[#allocation144_spill] sm:$0xff]  ;;  %v5472_v59 = vld [vmem:[#allocation18_spill] sm:$0xff] }
 0x117   :  { %1724 = vst [vmem:[%s4564_s4 + $0x50] sm:$0xff] %v1626_v54  ;;  %1725 = vst [vmem:[%s4564_s4 + $0x58] sm:$0xff] %v1627_v19  ;;  %v1641_v15 = vadd.f32 %v5462_v53, %v5467_v7  ;;  %v1642_v51 = vadd.f32 %v5462_v53, %v5468_v39  ;;  %v1643_v29 = vadd.f32 %v5462_v53, %v5469_v28  ;;  %v5473_v19 = vld [vmem:[#allocation19_spill] sm:$0xff]  ;;  %v5482_v7 = vld [vmem:[#allocation28_spill] sm:$0xff] }
 0x118   :  { %1726 = vst [vmem:[%s4564_s4 + $0x60] sm:$0xff] %v1628_v25  ;;  %1727 = vst [vmem:[%s4564_s4 + $0x68] sm:$0xff] %v1629_v6  ;;  %v1644_v30 = vadd.f32 %v5462_v53, %v3792_v47  ;;  %v1645_v2 = vadd.f32 %v5462_v53, %v5470_v14  ;;  %v5471_v47 = vld [vmem:[#allocation17_spill] sm:$0xff]  ;;  %v1647_v9 = vadd.f32 %v5462_v53, %v5472_v59  ;;  %v5481_v32 = vld [vmem:[#allocation27_spill] sm:$0xff] }
 0x119   :  { %1728 = vst [vmem:[%s4564_s4 + $0x70] sm:$0xff] %v1630_v61  ;;  %1729 = vst [vmem:[%s4564_s4 + $0x78] sm:$0xff] %v1631_v4  ;;  %v1646_v17 = vadd.f32 %v5462_v53, %v5471_v47  ;;  %v1648_v54 = vadd.f32 %v5462_v53, %v3808_v23  ;;  %v1649_v25 = vadd.f32 %v5462_v53, %v5473_v19  ;;  %v5474_v23 = vld [vmem:[#allocation20_spill] sm:$0xff]  ;;  %v5475_v61 = vld [vmem:[#allocation21_spill] sm:$0xff] }
 0x11a   :  { %1730 = vst [vmem:[%s4564_s4 + $0x80] sm:$0xff] %v1632_v62  ;;  %1731 = vst [vmem:[%s4564_s4 + $0x88] sm:$0xff] %v1633_v12  ;;  %v1650_v6 = vadd.f32 %v5462_v53, %v5474_v23  ;;  %v1651_v4 = vadd.f32 %v5462_v53, %v5475_v61  ;;  %v1652_v62 = vadd.f32 %v5462_v53, %v3824_v40  ;;  %v5476_v12 = vld [vmem:[#allocation22_spill] sm:$0xff]  ;;  %v5477_v40 = vld [vmem:[#allocation23_spill] sm:$0xff] }
 0x11b   :  { %1732 = vst [vmem:[%s4564_s4 + $0x90] sm:$0xff] %v1634_v27  ;;  %1733 = vst [vmem:[%s4564_s4 + $0x98] sm:$0xff] %v1635_v45  ;;  %v1653_v27 = vadd.f32 %v5462_v53, %v5476_v12  ;;  %v1654_v46 = vadd.f32 %v5462_v53, %v5477_v40  ;;  %v5478_v45 = vld [vmem:[#allocation24_spill] sm:$0xff]  ;;  %v1656_v44 = vadd.f32 %v5462_v53, %v3840_v48  ;;  %v5480_v48 = vld [vmem:[#allocation26_spill] sm:$0xff] }
 0x11c   :  { %1734 = vst [vmem:[%s4564_s4 + $0xa0] sm:$0xff] %v1636_v3  ;;  %1735 = vst [vmem:[%s4564_s4 + $0xa8] sm:$0xff] %v1637_v5  ;;  %v1655_v3 = vadd.f32 %v5462_v53, %v5478_v45  ;;  %v5479_v5 = vld [vmem:[#allocation25_spill] sm:$0xff]  ;;  %v1668_v59 = vadd.f32 %v5462_v53, %v3888_v31  ;;  %v5491_v61 = vld [vmem:[#allocation39_spill] sm:$0xff]  ;;  %v1676_v40 = vadd.f32 %v5462_v53, %v3920_v42 }
 0x11d   :  { %1736 = vst [vmem:[%s4564_s4 + $0xb0] sm:$0xff] %v1638_v18  ;;  %1737 = vst [vmem:[%s4564_s4 + $0xb8] sm:$0xff] %v1639_v43  ;;  %v1657_v8 = vadd.f32 %v5462_v53, %v5479_v5  ;;  %v1658_v18 = vadd.f32 %v5462_v53, %v5480_v48  ;;  %v1659_v43 = vadd.f32 %v5462_v53, %v5481_v32  ;;  %v5487_v47 = vld [vmem:[#allocation33_spill] sm:$0xff] }
 0x11e   :  { %1738 = vst [vmem:[%s4564_s4 + $0xc0] sm:$0xff] %v1640_v1  ;;  %1739 = vst [vmem:[%s4564_s4 + $0xc8] sm:$0xff] %v1641_v15  ;;  %v1660_v1 = vadd.f32 %v5462_v53, %v3856_v33  ;;  %v1661_v15 = vadd.f32 %v5462_v53, %v5482_v7  ;;  %v5483_v33 = vld [vmem:[#allocation29_spill] sm:$0xff]  ;;  %v1681_v48 = vadd.f32 %v5462_v53, %v3940_v52 }
 0x11f   :  { %1740 = vst [vmem:[%s4564_s4 + $0xd0] sm:$0xff] %v1642_v51  ;;  %1741 = vst [vmem:[%s4564_s4 + $0xd8] sm:$0xff] %v1643_v29  ;;  %v1662_v39 = vadd.f32 %v5462_v53, %v5483_v33  ;;  %v5484_v51 = vld [vmem:[#allocation30_spill] sm:$0xff]  ;;  %v1664_v29 = vadd.f32 %v5462_v53, %v3872_v41  ;;  %v5486_v41 = vld [vmem:[#allocation32_spill] sm:$0xff]  ;;  %v1684_v32 = vadd.f32 %v5462_v53, %v3952_v16 }
 0x120   :  { %1742 = vst [vmem:[%s4564_s4 + $0xe0] sm:$0xff] %v1644_v30  ;;  %1743 = vst [vmem:[%s4564_s4 + $0xe8] sm:$0xff] %v1645_v2  ;;  %v1663_v28 = vadd.f32 %v5462_v53, %v5484_v51  ;;  %v5485_v30 = vld [vmem:[#allocation31_spill] sm:$0xff]  ;;  %v1666_v2 = vadd.f32 %v5462_v53, %v5486_v41  ;;  %v5489_v31 = vld [vmem:[#allocation37_spill] sm:$0xff]  ;;  %v1685_v52 = vadd.f32 %v5462_v53, %v3956_v10 }
 0x121   :  { %1744 = vst [vmem:[%s4564_s4 + $0xf0] sm:$0xff] %v1646_v17  ;;  %1745 = vst [vmem:[%s4564_s4 + $0xf8] sm:$0xff] %v1647_v9  ;;  %v1665_v14 = vadd.f32 %v5462_v53, %v5485_v30  ;;  %v1667_v17 = vadd.f32 %v5462_v53, %v5487_v47  ;;  %v5488_v9 = vld [vmem:[#allocation34_spill] sm:$0xff]  ;;  %v1670_v19 = vadd.f32 %v5462_v53, %v5489_v31  ;;  %v5493_v12 = vld [vmem:[#allocation41_spill] sm:$0xff] }
 0x122   :  { %1746 = vst [vmem:[%s4564_s4 + $0x100] sm:$0xff] %v1648_v54  ;;  %1747 = vst [vmem:[%s4564_s4 + $0x108] sm:$0xff] %v1649_v25  ;;  %v1669_v54 = vadd.f32 %v5462_v53, %v5488_v9  ;;  %v5490_v25 = vld [vmem:[#allocation38_spill] sm:$0xff]  ;;  %v5495_v42 = vld [vmem:[#allocation145_spill] sm:$0xff]  ;;  %v1689_v10 = vadd.f32 %v5462_v53, %v3972_v60  ;;  %v1696_v30 = vadd.f32 %v5462_v53, %v4000_v58 }
 0x123   :  { %1748 = vst [vmem:[%s4564_s4 + $0x110] sm:$0xff] %v1650_v6  ;;  %1749 = vst [vmem:[%s4564_s4 + $0x118] sm:$0xff] %v1651_v4  ;;  %v1671_v23 = vadd.f32 %v5462_v53, %v5490_v25  ;;  %v1672_v6 = vadd.f32 %v5462_v53, %v3904_v34  ;;  %v1673_v4 = vadd.f32 %v5462_v53, %v5491_v61  ;;  %v5492_v34 = vld [vmem:[#allocation40_spill] sm:$0xff]  ;;  %v5501_v60 = vld [vmem:[#allocation46_spill] sm:$0xff] }
 0x124   :  { %1750 = vst [vmem:[%s4564_s4 + $0x120] sm:$0xff] %v1652_v62  ;;  %1751 = vst [vmem:[%s4564_s4 + $0x128] sm:$0xff] %v1653_v27  ;;  %v1674_v62 = vadd.f32 %v5462_v53, %v5492_v34  ;;  %v1675_v27 = vadd.f32 %v5462_v53, %v5493_v12  ;;  %v5502_v51 = vld [vmem:[#allocation151_spill] sm:$0xff]  ;;  %v1698_v58 = vadd.f32 %v5462_v53, %v4008_v0  ;;  %v5505_v47 = vld [vmem:[#allocation156_spill] sm:$0xff] }
 0x125   :  { %1752 = vst [vmem:[%s4564_s4 + $0x130] sm:$0xff] %v1654_v46  ;;  %1753 = vst [vmem:[%s4564_s4 + $0x138] sm:$0xff] %v1655_v3  ;;  %v5494_v46 = vld [vmem:[#allocation42_spill] sm:$0xff]  ;;  %v1678_v3 = vadd.f32 %v5462_v53, %v5495_v42  ;;  %v1700_v41 = vadd.f32 %v5462_v53, %v4016_v20  ;;  %v5503_v0 = vld [vmem:[#allocation47_spill] sm:$0xff]  ;;  %v1707_v31 = vadd.f32 %v5462_v53, %v4044_v11 }
 0x126   :  { %1754 = vst [vmem:[%s4564_s4 + $0x140] sm:$0xff] %v1656_v44  ;;  %1755 = vst [vmem:[%s4564_s4 + $0x148] sm:$0xff] %v1657_v8  ;;  %v1677_v45 = vadd.f32 %v5462_v53, %v5494_v46  ;;  %v5496_v44 = vld [vmem:[#allocation43_spill] sm:$0xff]  ;;  %v1680_v8 = vadd.f32 %v5462_v53, %v3936_v50  ;;  %v1682_v50 = vadd.f32 %v5462_v53, %v3944_v55  ;;  %v5504_v20 = vld [vmem:[#allocation48_spill] sm:$0xff] }
 0x127   :  { %1756 = vst [vmem:[%s4564_s4 + $0x150] sm:$0xff] %v1658_v18  ;;  %1757 = vst [vmem:[%s4564_s4 + $0x158] sm:$0xff] %v1659_v43  ;;  %v1679_v5 = vadd.f32 %v5462_v53, %v5496_v44  ;;  %v1683_v18 = vadd.f32 %v5462_v53, %v3948_v56  ;;  %v1686_v55 = vadd.f32 %v5462_v53, %v3960_v24  ;;  %v5497_v56 = vld [vmem:[#allocation44_spill] sm:$0xff]  ;;  %v5498_v24 = vld [vmem:[#allocation149_spill] sm:$0xff] }
 0x128   :  { %1758 = vst [vmem:[%s4564_s4 + $0x160] sm:$0xff] %v1660_v1  ;;  %1759 = vst [vmem:[%s4564_s4 + $0x168] sm:$0xff] %v1661_v15  ;;  %v1687_v16 = vadd.f32 %v5462_v53, %v5497_v56  ;;  %v1688_v43 = vadd.f32 %v5462_v53, %v3968_v13  ;;  %v1690_v13 = vadd.f32 %v5462_v53, %v5498_v24  ;;  %v5499_v1 = vld [vmem:[#allocation45_spill] sm:$0xff]  ;;  %v5500_v15 = vld [vmem:[#allocation150_spill] sm:$0xff] }
 0x129   :  { %1760 = vst [vmem:[%s4564_s4 + $0x170] sm:$0xff] %v1662_v39  ;;  %1761 = vst [vmem:[%s4564_s4 + $0x178] sm:$0xff] %v1663_v28  ;;  %v1691_v7 = vadd.f32 %v5462_v53, %v5499_v1  ;;  %v1692_v33 = vadd.f32 %v5462_v53, %v5500_v15  ;;  %v1693_v39 = vadd.f32 %v5462_v53, %v5501_v60  ;;  %v5507_v9 = vld [vmem:[#allocation35_spill] sm:$0xff] }
 0x12a   :  { %1762 = vst [vmem:[%s4564_s4 + $0x180] sm:$0xff] %v1664_v29  ;;  %1763 = vst [vmem:[%s4564_s4 + $0x188] sm:$0xff] %v1665_v14  ;;  %v1694_v28 = vadd.f32 %v5462_v53, %v5502_v51  ;;  %v1695_v29 = vadd.f32 %v5462_v53, %v3996_v57  ;;  %v1697_v57 = vadd.f32 %v5462_v53, %v4004_v63 }
 0x12b   :  { %1764 = vst [vmem:[%s4564_s4 + $0x190] sm:$0xff] %v1666_v2  ;;  %1765 = vst [vmem:[%s4564_s4 + $0x198] sm:$0xff] %v1667_v17  ;;  %v1699_v14 = vadd.f32 %v5462_v53, %v4012_v26  ;;  %v1701_v63 = vadd.f32 %v5462_v53, %v4020_v49  ;;  %v1702_v26 = vadd.f32 %v5462_v53, %v5503_v0  ;;  %v5506_v49 = vld [vmem:[#allocation49_spill] sm:$0xff] }
 0x12c   :  { %1766 = vst [vmem:[%s4564_s4 + $0x1a0] sm:$0xff] %v1668_v59  ;;  %1767 = vst [vmem:[%s4564_s4 + $0x1a8] sm:$0xff] %v1669_v54  ;;  %v1703_v2 = vadd.f32 %v5462_v53, %v5504_v20  ;;  %v1704_v17 = vadd.f32 %v5462_v53, %v5505_v47  ;;  %v1705_v59 = vadd.f32 %v5462_v53, %v5506_v49 }
 0x12d   :  { %1768 = vst [vmem:[%s4564_s4 + $0x1b0] sm:$0xff] %v1670_v19  ;;  %1769 = vst [vmem:[%s4564_s4 + $0x1b8] sm:$0xff] %v1671_v23  ;;  %v1706_v54 = vadd.f32 %v5462_v53, %v5507_v9  ;;  %v1708_v19 = vadd.f32 %v5462_v53, %v4048_v35  ;;  %v1709_v11 = vadd.f32 %v5462_v53, %v4052_v36 }
 0x12e   :  { %1770 = vst [vmem:[%s4564_s4 + $0x1c0] sm:$0xff] %v1672_v6  ;;  %1771 = vst [vmem:[%s4564_s4 + $0x1c8] sm:$0xff] %v1673_v4  ;;  %v1710_v35 = vadd.f32 %v5462_v53, %v4056_v37  ;;  %v1711_v25 = vadd.f32 %v5462_v53, %v4060_v38  ;;  %v1712_v23 = vadd.f32 %v5462_v53, %v4064_v21 }
 0x12f   :  { %1772 = vst [vmem:[%s4564_s4 + $0x1d0] sm:$0xff] %v1674_v62  ;;  %1773 = vst [vmem:[%s4564_s4 + $0x1d8] sm:$0xff] %v1675_v27  ;;  %v1713_v36 = vadd.f32 %v5462_v53, %v4068_v22 }
 0x130   :  { %1774 = vst [vmem:[%s4564_s4 + $0x1e0] sm:$0xff] %v1676_v40  ;;  %1775 = vst [vmem:[%s4564_s4 + $0x1e8] sm:$0xff] %v1677_v45 }
 0x131   :  { %1776 = vst [vmem:[%s4564_s4 + $0x1f0] sm:$0xff] %v1678_v3  ;;  %1777 = vst [vmem:[%s4564_s4 + $0x1f8] sm:$0xff] %v1679_v5 }
 0x132   :  { %1778 = vst [vmem:[%s4564_s4 + $0x200] sm:$0xff] %v1680_v8  ;;  %1779 = vst [vmem:[%s4564_s4 + $0x208] sm:$0xff] %v1681_v48 }
 0x133   :  { %1780 = vst [vmem:[%s4564_s4 + $0x210] sm:$0xff] %v1682_v50  ;;  %1781 = vst [vmem:[%s4564_s4 + $0x218] sm:$0xff] %v1683_v18 }
 0x134   :  { %1782 = vst [vmem:[%s4564_s4 + $0x220] sm:$0xff] %v1684_v32  ;;  %1783 = vst [vmem:[%s4564_s4 + $0x228] sm:$0xff] %v1685_v52 }
 0x135   :  { %1784 = vst [vmem:[%s4564_s4 + $0x230] sm:$0xff] %v1686_v55  ;;  %1785 = vst [vmem:[%s4564_s4 + $0x238] sm:$0xff] %v1687_v16 }
 0x136   :  { %1786 = vst [vmem:[%s4564_s4 + $0x240] sm:$0xff] %v1688_v43  ;;  %1787 = vst [vmem:[%s4564_s4 + $0x248] sm:$0xff] %v1689_v10 }
 0x137   :  { %1788 = vst [vmem:[%s4564_s4 + $0x250] sm:$0xff] %v1690_v13  ;;  %1789 = vst [vmem:[%s4564_s4 + $0x258] sm:$0xff] %v1691_v7 }
 0x138   :  { %1790 = vst [vmem:[%s4564_s4 + $0x260] sm:$0xff] %v1692_v33  ;;  %1791 = vst [vmem:[%s4564_s4 + $0x268] sm:$0xff] %v1693_v39 }
 0x139   :  { %1792 = vst [vmem:[%s4564_s4 + $0x270] sm:$0xff] %v1694_v28  ;;  %1793 = vst [vmem:[%s4564_s4 + $0x278] sm:$0xff] %v1695_v29 }
 0x13a   :  { %1794 = vst [vmem:[%s4564_s4 + $0x280] sm:$0xff] %v1696_v30  ;;  %1795 = vst [vmem:[%s4564_s4 + $0x288] sm:$0xff] %v1697_v57 }
 0x13b   :  { %1796 = vst [vmem:[%s4564_s4 + $0x290] sm:$0xff] %v1698_v58  ;;  %1797 = vst [vmem:[%s4564_s4 + $0x298] sm:$0xff] %v1699_v14 }
 0x13c   :  { %1798 = vst [vmem:[%s4564_s4 + $0x2a0] sm:$0xff] %v1700_v41  ;;  %1799 = vst [vmem:[%s4564_s4 + $0x2a8] sm:$0xff] %v1701_v63 }
 0x13d   :  { %1800 = vst [vmem:[%s4564_s4 + $0x2b0] sm:$0xff] %v1702_v26  ;;  %1801 = vst [vmem:[%s4564_s4 + $0x2b8] sm:$0xff] %v1703_v2 }
 0x13e   :  { %1802 = vst [vmem:[%s4564_s4 + $0x2c0] sm:$0xff] %v1704_v17  ;;  %1803 = vst [vmem:[%s4564_s4 + $0x2c8] sm:$0xff] %v1705_v59 }
 0x13f   :  { %1804 = vst [vmem:[%s4564_s4 + $0x2d0] sm:$0xff] %v1706_v54  ;;  %1805 = vst [vmem:[%s4564_s4 + $0x2d8] sm:$0xff] %v1707_v31 }
 0x140   :  { %1806 = vst [vmem:[%s4564_s4 + $0x2e0] sm:$0xff] %v1708_v19  ;;  %1807 = vst [vmem:[%s4564_s4 + $0x2e8] sm:$0xff] %v1709_v11 }
 0x141   :  { %1808 = vst [vmem:[%s4564_s4 + $0x2f0] sm:$0xff] %v1710_v35  ;;  %1809 = vst [vmem:[%s4564_s4 + $0x2f8] sm:$0xff] %v1711_v25 }
 0x142   :  { %1810 = vst [vmem:[%s4564_s4 + $0x300] sm:$0xff] %v1712_v23  ;;  %1811 = vst [vmem:[%s4564_s4 + $0x308] sm:$0xff] %v1713_v36 }
 0x143   :  { %1816 = vsyncpa [#allocation9], 1 }
 0x144   :  { %1817 = vsyncpa [#allocation10], 1 }

</bundles_post_ra>
